<compile_context>
chip_gen: v5e
topology: v5e:2x2
jax: 0.10.0
libtpu: 0.0.40
codegen_flags: <defaults>
</compile_context>

<pallas_src>
import functools

import jax
import jax.numpy as jnp
from jax.experimental import pallas as pl
from jax.experimental.pallas import tpu as pltpu


def _unit_kernel(x_ref, s_ref, wx_ref, ws_ref, whs_ref, b_ref, out_ref):
    """One (C, TN) tile of points.

    x_ref, s_ref : (1, C, TN) bf16
    wx_ref       : (3C, C)    bf16   rows = [Wz_x ; Wr_x ; Wh_x]
    ws_ref       : (2C, C)    bf16   rows = [Wz_s ; Wr_s]
    whs_ref      : (C, C)     bf16   Wh_s (the r*s half of Wh)
    b_ref        : (3C, 1)    f32    [bz ; br ; bh]
    out_ref      : (1, C, TN) f32
    """
    C = x_ref.shape[1]

    x = x_ref[0]                           # (C, TN) bf16
    s = s_ref[0]                           # (C, TN) bf16

    # x contribution to [z ; r ; h] pre-activations (+ bias), f32 accumulation.
    pre = jnp.dot(wx_ref[...], x,
                  preferred_element_type=jnp.float32) + b_ref[...]    # (3C, TN)
    # s contribution to [z ; r] pre-activations.
    zr_s = jnp.dot(ws_ref[...], s,
                   preferred_element_type=jnp.float32)                # (2C, TN)

    z_pre = pre[:C, :] + zr_s[:C, :]
    r_pre = pre[C:2 * C, :] + zr_s[C:, :]
    h_x = pre[2 * C:, :]                   # Wh_x @ x + bh

    # EUP-friendly sigmoid: exp on EUP, divide via approx reciprocal (EUP slot).
    z = pl.reciprocal(1.0 + jnp.exp(-z_pre), approx=True)
    r = pl.reciprocal(1.0 + jnp.exp(-r_pre), approx=True)

    s_f32 = s.astype(jnp.float32)
    h_s = jnp.dot(whs_ref[...], (r * s_f32).astype(jnp.bfloat16),
                  preferred_element_type=jnp.float32)                 # (C, TN)

    h_hat = jnp.maximum(h_x + h_s, 0.0)

    # Blend in f32 (re-upcast x): h = x + z * (h_hat - x)  ==  (1-z)*x + z*h_hat
    x_f32 = x.astype(jnp.float32)
    out_ref[0] = (x_f32 + z * (h_hat - x_f32)).astype(out_ref.dtype)


def _pick_tile_n(B, C, N, tile_n):
    """Largest point tile that divides N, is lane-aligned, fits a conservative
    VMEM budget (sized against v7x's 64 MiB), and leaves >= 2 grid steps."""
    def fits(t):
        # double-buffered bf16 x/s + f32 out, plus ~12 C-row f32 intermediates.
        io = 2 * (2 * C * t * 2) + 2 * (C * t * 4)
        interm = 12 * C * t * 4
        return io + interm <= 20 * 1024 * 1024

    if tile_n is not None:
        tn = min(tile_n, N)
    else:
        tn = None
        for cand in (4096, 2048, 1024, 512, 384, 256, 128):
            if N % cand == 0 and fits(cand):
                tn = cand
                break
        if tn is None:
            tn = N                      # small / ragged N: one full-width tile

    # Keep both v7x TensorCores busy: ensure at least 2 grid steps if possible.
    if B * (N // max(tn, 1)) < 2:
        half = tn // 2
        if half >= 128 and half % 128 == 0 and N % half == 0:
            tn = half
    return tn


@functools.partial(jax.jit, static_argnames=("tile_n",))
def unit_forward(cur_x, prev_s, w_x, w_s, wh_s, b_big, tile_n=None):
    """
    Args:
      cur_x, prev_s : (B, C, N)  bf16 preferred (f32 is cast down here).
      w_x           : (3C, C) bf16  -- [Wz_x ; Wr_x ; Wh_x]  (BN folded).
      w_s           : (2C, C) bf16  -- [Wz_s ; Wr_s]         (BN folded).
      wh_s          : (C, C)  bf16  -- Wh_s                  (BN folded).
      b_big         : (3C, 1) f32   -- [bz ; br ; bh]        (BN folded).
      tile_n        : optional override of the point tile (multiple of 128).
    Returns:
      (h, h) with h of shape (B, C, N), f32.
    """
    B, C, N = cur_x.shape
    assert C % 8 == 0, "C must be a multiple of 8 (sublane alignment)"

    # Intended fast path is bf16 activations supplied by the caller; cast here
    # only as a convenience fallback.
    if cur_x.dtype != jnp.bfloat16:
        cur_x = cur_x.astype(jnp.bfloat16)
    if prev_s.dtype != jnp.bfloat16:
        prev_s = prev_s.astype(jnp.bfloat16)

    tn = _pick_tile_n(B, C, N, tile_n)
    assert N % tn == 0, "N must be divisible by the point tile"
    assert tn % 128 == 0 or tn == N, "tile must be a multiple of 128 (or == N)"

    grid = (B, N // tn)

    data_spec = pl.BlockSpec((1, C, tn), lambda b, n: (b, 0, n))
    wx_spec = pl.BlockSpec((3 * C, C), lambda b, n: (0, 0))
    ws_spec = pl.BlockSpec((2 * C, C), lambda b, n: (0, 0))
    whs_spec = pl.BlockSpec((C, C), lambda b, n: (0, 0))
    b_spec = pl.BlockSpec((3 * C, 1), lambda b, n: (0, 0))

    h = pl.pallas_call(
        _unit_kernel,
        out_shape=jax.ShapeDtypeStruct((B, C, N), jnp.float32),
        grid_spec=pltpu.PrefetchScalarGridSpec(
            num_scalar_prefetch=0,
            grid=grid,
            in_specs=[data_spec, data_spec, wx_spec, ws_spec, whs_spec, b_spec],
            out_specs=data_spec,
        ),
        compiler_params=pltpu.CompilerParams(
            dimension_semantics=("parallel", "parallel"),
            vmem_limit_bytes=32 * 1024 * 1024),
    )(cur_x, prev_s, w_x, w_s, wh_s, b_big)
    return h, h


def make_params(key, in_channel):
    """Deterministic synthetic Conv1d(k=1)+BN params, BN folded into W/b.

    Returns (kernel_params, raw):
      kernel_params: packed bf16 split weights (w_x, w_s, wh_s) + f32 bias.
      raw: folded f32 per-gate weights/biases for the pure-JAX reference.
    BN fold uses eval-mode stats (gamma=1, beta=0, mean=0, var=1, eps=1e-5).
    """
    C = in_channel
    eps = 1e-5
    gamma = jnp.ones((C,), jnp.float32)
    beta = jnp.zeros((C,), jnp.float32)
    mean = jnp.zeros((C,), jnp.float32)
    var = jnp.ones((C,), jnp.float32)
    scale = gamma / jnp.sqrt(var + eps)              # (C_out,)

    keys = jax.random.split(key, 6)
    raw = {}
    for i, name in enumerate(["z", "r", "h"]):
        w = jax.random.normal(keys[2 * i], (C, 2 * C), jnp.float32) * 0.05
        b = jax.random.normal(keys[2 * i + 1], (C,), jnp.float32) * 0.05
        raw[f"w{name}"] = w * scale[:, None]          # (C, 2C), BN folded
        raw[f"b{name}"] = (b - mean) * scale + beta   # (C,)

    # Split packing (no zero blocks, no in-kernel concat):
    w_x = jnp.concatenate(
        [raw["wz"][:, :C], raw["wr"][:, :C], raw["wh"][:, :C]],
        axis=0).astype(jnp.bfloat16)                                  # (3C, C)
    w_s = jnp.concatenate(
        [raw["wz"][:, C:], raw["wr"][:, C:]], axis=0).astype(jnp.bfloat16)  # (2C, C)
    wh_s = raw["wh"][:, C:].astype(jnp.bfloat16)                      # (C, C)
    b_big = jnp.concatenate([raw["bz"], raw["br"], raw["bh"]],
                            axis=0).reshape(3 * C, 1)                 # (3C, 1) f32

    kernel_params = dict(w_x=w_x, w_s=w_s, wh_s=wh_s, b_big=b_big)
    return kernel_params, raw


def unit_reference(cur_x, prev_s, raw):
    """Pure-JAX f32 reference in the original channels-first conv sense."""
    def conv(w, b, inp):                              # 1x1 conv on (B, C, N)
        return jnp.einsum("oc,bcn->bon", w, inp) + b[None, :, None]

    xs = jnp.concatenate([cur_x, prev_s], axis=1)
    z = jax.nn.sigmoid(conv(raw["wz"], raw["bz"], xs))
    r = jax.nn.sigmoid(conv(raw["wr"], raw["br"], xs))
    xrs = jnp.concatenate([cur_x, r * prev_s], axis=1)
    h_hat = jnp.maximum(conv(raw["wh"], raw["bh"], xrs), 0.0)
    return (1.0 - z) * cur_x + z * h_hat


if __name__ == "__main__":
    # Small shapes consistent with the module: (B, in_channel, N)
    B, C, N = 2, 64, 512
    key = jax.random.PRNGKey(0)
    k_x, k_s, k_p = jax.random.split(key, 3)
    cur_x_f32 = jax.random.normal(k_x, (B, C, N), jnp.float32)
    prev_s_f32 = jax.random.normal(k_s, (B, C, N), jnp.float32)

    kp, raw = make_params(k_p, C)

    # Intended fast path: caller supplies bf16 activations (halves HBM traffic).
    cur_x = cur_x_f32.astype(jnp.bfloat16)
    prev_s = prev_s_f32.astype(jnp.bfloat16)

    # step > 1 path (the interesting one)
    h, h2 = unit_forward(cur_x, prev_s, kp["w_x"], kp["w_s"], kp["wh_s"],
                         kp["b_big"])
    h = jax.block_until_ready(h)

    # Reference on the same bf16-rounded inputs (upcast to f32), folded weights.
    ref = unit_reference(cur_x.astype(jnp.float32), prev_s.astype(jnp.float32),
                         raw)
    assert h.shape == (B, C, N) and h.dtype == jnp.float32
    max_err = float(jnp.max(jnp.abs(h - ref)))
    # bf16 MXU operands + approx reciprocal (f32 accumulation) -> loosened tol.
    assert jnp.allclose(h, ref, atol=5e-2, rtol=5e-2), \
        f"mismatch vs reference: max abs err {max_err}"

    # step == 1 path: identity passthrough (no kernel needed)
    h1a, h1b = cur_x, cur_x
    assert h1a.shape == (B, C, N)

    print("KERNEL_OK")
</pallas_src>

<mosaic_0001>
module attributes {stable_mosaic.version = 11 : i64} {
  func.func @_unit_kernel(%arg0: i32, %arg1: i32, %arg2: memref<1x64x512xbf16, #tpu.memory_space<vmem>>, %arg3: memref<1x64x512xbf16, #tpu.memory_space<vmem>>, %arg4: memref<192x64xbf16, #tpu.memory_space<vmem>>, %arg5: memref<128x64xbf16, #tpu.memory_space<vmem>>, %arg6: memref<64x64xbf16, #tpu.memory_space<vmem>>, %arg7: memref<192x1xf32, #tpu.memory_space<vmem>>, %arg8: memref<1x64x512xf32, #tpu.memory_space<vmem>>) attributes {dimension_semantics = [#tpu.dimension_semantics<parallel>, #tpu.dimension_semantics<parallel>], iteration_bounds = array<i64: 2, 1>, scalar_prefetch = 0 : i64, scratch_operands = 0 : i64, tpu.core_type = #tpu.core_type<tc>, window_params = [{transform_indices = @transform_0, window_bounds = array<i64: 1, 64, 512>}, {transform_indices = @transform_1, window_bounds = array<i64: 1, 64, 512>}, {pipeline_mode = #tpu.pipeline_mode<synchronous>, transform_indices = @transform_2, window_bounds = array<i64: 192, 64>}, {pipeline_mode = #tpu.pipeline_mode<synchronous>, transform_indices = @transform_3, window_bounds = array<i64: 128, 64>}, {pipeline_mode = #tpu.pipeline_mode<synchronous>, transform_indices = @transform_4, window_bounds = array<i64: 64, 64>}, {pipeline_mode = #tpu.pipeline_mode<synchronous>, transform_indices = @transform_5, window_bounds = array<i64: 192, 1>}, {transform_indices = @transform_6, window_bounds = array<i64: 1, 64, 512>}]} {
    %c0 = arith.constant 0 : index
    %c0_0 = arith.constant 0 : index
    %c0_1 = arith.constant 0 : index
    %0 = vector.load %arg2[%c0, %c0_0, %c0_1] : memref<1x64x512xbf16, #tpu.memory_space<vmem>>, vector<1x64x512xbf16>
    %1 = vector.shape_cast %0 : vector<1x64x512xbf16> to vector<64x512xbf16>
    %c0_2 = arith.constant 0 : index
    %c0_3 = arith.constant 0 : index
    %c0_4 = arith.constant 0 : index
    %2 = vector.load %arg3[%c0_2, %c0_3, %c0_4] : memref<1x64x512xbf16, #tpu.memory_space<vmem>>, vector<1x64x512xbf16>
    %3 = vector.shape_cast %2 : vector<1x64x512xbf16> to vector<64x512xbf16>
    %c0_5 = arith.constant 0 : index
    %c0_6 = arith.constant 0 : index
    %4 = vector.load %arg4[%c0_5, %c0_6] : memref<192x64xbf16, #tpu.memory_space<vmem>>, vector<192x64xbf16>
    %cst = arith.constant dense<0.000000e+00> : vector<192x512xf32>
    %5 = tpu.matmul %4, %1, %cst {dimension_numbers = #tpu.dot_dimension_numbers<[1], [0], [0], [1], [0, 0, 1, 1], [], []>} : vector<192x64xbf16>, vector<64x512xbf16>, vector<192x512xf32> -> vector<192x512xf32>
    %c0_7 = arith.constant 0 : index
    %c0_8 = arith.constant 0 : index
    %6 = vector.load %arg7[%c0_7, %c0_8] : memref<192x1xf32, #tpu.memory_space<vmem>>, vector<192x1xf32>
    %7 = vector.broadcast %6 : vector<192x1xf32> to vector<192x512xf32>
    %8 = arith.addf %5, %7 : vector<192x512xf32>
    %c0_9 = arith.constant 0 : index
    %c0_10 = arith.constant 0 : index
    %9 = vector.load %arg5[%c0_9, %c0_10] : memref<128x64xbf16, #tpu.memory_space<vmem>>, vector<128x64xbf16>
    %cst_11 = arith.constant dense<0.000000e+00> : vector<128x512xf32>
    %10 = tpu.matmul %9, %3, %cst_11 {dimension_numbers = #tpu.dot_dimension_numbers<[1], [0], [0], [1], [0, 0, 1, 1], [], []>} : vector<128x64xbf16>, vector<64x512xbf16>, vector<128x512xf32> -> vector<128x512xf32>
    %11 = vector.extract_strided_slice %8 {offsets = [0, 0], sizes = [64, 512], strides = [1, 1]} : vector<192x512xf32> to vector<64x512xf32>
    %12 = vector.extract_strided_slice %10 {offsets = [0, 0], sizes = [64, 512], strides = [1, 1]} : vector<128x512xf32> to vector<64x512xf32>
    %13 = arith.addf %11, %12 : vector<64x512xf32>
    %14 = vector.extract_strided_slice %8 {offsets = [64, 0], sizes = [64, 512], strides = [1, 1]} : vector<192x512xf32> to vector<64x512xf32>
    %15 = vector.extract_strided_slice %10 {offsets = [64, 0], sizes = [64, 512], strides = [1, 1]} : vector<128x512xf32> to vector<64x512xf32>
    %16 = arith.addf %14, %15 : vector<64x512xf32>
    %17 = vector.extract_strided_slice %8 {offsets = [128, 0], sizes = [64, 512], strides = [1, 1]} : vector<192x512xf32> to vector<64x512xf32>
    %cst_12 = arith.constant 0.000000e+00 : f32
    %18 = vector.broadcast %cst_12 : f32 to vector<64x512xf32>
    %19 = arith.subf %18, %13 : vector<64x512xf32>
    %20 = math.exp %19 : vector<64x512xf32>
    %cst_13 = arith.constant 1.000000e+00 : f32
    %21 = vector.broadcast %cst_13 : f32 to vector<64x512xf32>
    %22 = arith.addf %21, %20 : vector<64x512xf32>
    %23 = tpu.reciprocal %22 {approx = true} : vector<64x512xf32> -> vector<64x512xf32>
    %cst_14 = arith.constant 0.000000e+00 : f32
    %24 = vector.broadcast %cst_14 : f32 to vector<64x512xf32>
    %25 = arith.subf %24, %16 : vector<64x512xf32>
    %26 = math.exp %25 : vector<64x512xf32>
    %cst_15 = arith.constant 1.000000e+00 : f32
    %27 = vector.broadcast %cst_15 : f32 to vector<64x512xf32>
    %28 = arith.addf %27, %26 : vector<64x512xf32>
    %29 = tpu.reciprocal %28 {approx = true} : vector<64x512xf32> -> vector<64x512xf32>
    %30 = arith.extf %3 : vector<64x512xbf16> to vector<64x512xf32>
    %c0_16 = arith.constant 0 : index
    %c0_17 = arith.constant 0 : index
    %31 = vector.load %arg6[%c0_16, %c0_17] : memref<64x64xbf16, #tpu.memory_space<vmem>>, vector<64x64xbf16>
    %32 = arith.mulf %29, %30 : vector<64x512xf32>
    %33 = arith.truncf %32 : vector<64x512xf32> to vector<64x512xbf16>
    %cst_18 = arith.constant dense<0.000000e+00> : vector<64x512xf32>
    %34 = tpu.matmul %31, %33, %cst_18 {dimension_numbers = #tpu.dot_dimension_numbers<[1], [0], [0], [1], [0, 0, 1, 1], [], []>} : vector<64x64xbf16>, vector<64x512xbf16>, vector<64x512xf32> -> vector<64x512xf32>
    %35 = arith.addf %17, %34 : vector<64x512xf32>
    %cst_19 = arith.constant 0.000000e+00 : f32
    %36 = vector.broadcast %cst_19 : f32 to vector<64x512xf32>
    %37 = arith.maximumf %35, %36 : vector<64x512xf32>
    %38 = arith.extf %1 : vector<64x512xbf16> to vector<64x512xf32>
    %39 = arith.subf %37, %38 : vector<64x512xf32>
    %40 = arith.mulf %23, %39 : vector<64x512xf32>
    %41 = arith.addf %38, %40 : vector<64x512xf32>
    %c0_20 = arith.constant 0 : index
    %c0_21 = arith.constant 0 : index
    %c0_22 = arith.constant 0 : index
    %42 = vector.load %arg8[%c0_20, %c0_21, %c0_22] : memref<1x64x512xf32, #tpu.memory_space<vmem>>, vector<1x64x512xf32>
    %43 = vector.shape_cast %42 : vector<1x64x512xf32> to vector<64x512xf32>
    %44 = vector.shape_cast %41 : vector<64x512xf32> to vector<1x64x512xf32>
    tpu.vector_store %arg8[%c0_20, %c0_21, %c0_22], %44 {strides = array<i32>} : memref<1x64x512xf32, #tpu.memory_space<vmem>>, vector<1x64x512xf32>,
    return
  }
  func.func @transform_0(%arg0: i32, %arg1: i32) -> (i32, i32, i32) {
    %c0_i32 = arith.constant 0 : i32
    %c0_i32_0 = arith.constant 0 : i32
    return %arg0, %c0_i32, %arg1 : i32, i32, i32
  }
  func.func @transform_1(%arg0: i32, %arg1: i32) -> (i32, i32, i32) {
    %c0_i32 = arith.constant 0 : i32
    %c0_i32_0 = arith.constant 0 : i32
    return %arg0, %c0_i32, %arg1 : i32, i32, i32
  }
  func.func @transform_2(%arg0: i32, %arg1: i32) -> (i32, i32) {
    %c0_i32 = arith.constant 0 : i32
    %c0_i32_0 = arith.constant 0 : i32
    %c0_i32_1 = arith.constant 0 : i32
    return %c0_i32, %c0_i32_0 : i32, i32
  }
  func.func @transform_3(%arg0: i32, %arg1: i32) -> (i32, i32) {
    %c0_i32 = arith.constant 0 : i32
    %c0_i32_0 = arith.constant 0 : i32
    %c0_i32_1 = arith.constant 0 : i32
    return %c0_i32, %c0_i32_0 : i32, i32
  }
  func.func @transform_4(%arg0: i32, %arg1: i32) -> (i32, i32) {
    %c0_i32 = arith.constant 0 : i32
    %c0_i32_0 = arith.constant 0 : i32
    %c0_i32_1 = arith.constant 0 : i32
    return %c0_i32, %c0_i32_0 : i32, i32
  }
  func.func @transform_5(%arg0: i32, %arg1: i32) -> (i32, i32) {
    %c0_i32 = arith.constant 0 : i32
    %c0_i32_0 = arith.constant 0 : i32
    %c0_i32_1 = arith.constant 0 : i32
    return %c0_i32, %c0_i32_0 : i32, i32
  }
  func.func @transform_6(%arg0: i32, %arg1: i32) -> (i32, i32, i32) {
    %c0_i32 = arith.constant 0 : i32
    %c0_i32_0 = arith.constant 0 : i32
    return %arg0, %c0_i32, %arg1 : i32, i32, i32
  }
}

</mosaic_0001>

<bundles_post_ra>
// kernel: unit_forward.1
= control target key start
LH: loop header
LB: loop body
LE: loop exit
PB: predicated region body
PF: predicated region fallthrough
CT: control target
= control target key end

     0   :  { %11 = vsyncpa [#allocation3], 0  ;;  %s4521_s0 = inlined_call_operand.vmem [shape: bf16[2,64,512], index: 0, kind: input, shape index: {}]   ;;  %s4522_s1 = inlined_call_operand.hbm [shape: bf16[2,64,512], index: 1, kind: input, shape index: {}]   ;;  %s4523_s2 = inlined_call_operand.vmem [shape: bf16[192,64], index: 2, kind: input, shape index: {}]   ;;  %s4524_s3 = inlined_call_operand.vmem [shape: bf16[128,64], index: 3, kind: input, shape index: {}]   ;;  %s4525_s4 = inlined_call_operand.vmem [shape: bf16[64,64], index: 4, kind: input, shape index: {}]   ;;  %s4526_s5 = inlined_call_operand.vmem [shape: f32[192,1], index: 5, kind: input, shape index: {}]   ;;  %s4527_s6 = inlined_call_operand.vmem [shape: f32[2,64,512], index: 6, kind: output, shape index: {}]  }
   0x1   :  { %13 = vsyncpa [#allocation3 + $0x1], 0  ;;  %s3136_s21 = smov 0   ;;  %s3138_s22 = smov 0  }
   0x2   :  { %s3140_s23 = smov 0   ;;  %s3142_s24 = smov 0  }
   0x3   :  { %s3144_s25 = smov 0   ;;  %s3146_s26 = smov 0  }
   0x4 LB: > { %s2305_s27 = sadd.s32 4294967295, %s3096_s26   ;;  %s31_s28 = sadd.s32 1, %s3092_s25  ;;  %s3096_s26 = sphi %s3146_s26, %s19_s26   ;;  %s3092_s25 = sphi %s3144_s25, %s4710_s25   ;;  %s3088_s24 = sphi %s3142_s24, %s4709_s24   ;;  %s3084_s23 = sphi %s3140_s23, %s4708_s23   ;;  %s3080_s22 = sphi %s3138_s22, %s4707_s22   ;;  %s3076_s21 = sphi %s3136_s21, %s4706_s21  }
   0x5   : > { %p33_p0 = scmp.ge.s32.totalorder %s31_s28, 2  ;;  %s68_s29 = sadd.s32 1, %s3084_s23 }
   0x6   : > { %p75_p1 = scmp.ne.s32.totalorder %s3084_s23, %s3080_s22  ;;  %p76_p2 = scmp.eq.s32.totalorder %s3096_s26, 0 }
   0x7   : > { %s4712_s28 = smov (%p33_p0, %s31_s28), 0  ;;  %p81_p4 = scmp.ne.s32.totalorder %s3080_s22, %s3076_s21 }
   0x8   : > { %p3172_p3 = por %p76_p2, %p75_p1  ;;  %s63_s7 = ssub.s32 %s3092_s25, %s4712_s28 }
   0x9   : > { %p82_p5 = scmp.eq.s32.totalorder %s2305_s27, 0  ;;  %p66_p6 = scmp.eq.s32.totalorder %s63_s7, 0 }
   0xa   : > { %p2705_p8 = scmp.lt.s32.totalorder %s3096_s26, 2  ;;  %s242_s10 = sand.u32 1, %s3084_s23  }
   0xb   : > { %p3179_p7 = por %p82_p5, %p81_p4  ;;  %s2640_s11 = sshll.u32 %s3092_s25, 7 }
   0xc   : > { %s3185_s9 = scalar_select %p66_p6, %s3084_s23, %s68_s29  }
   0xd   : > { %s2309_s12 = sshll.u32 %s242_s10, 7  ;;  %s253_s15 = scalar_lea.hbm %s4522_s1, %s2640_s11 }
   0xe   : > { %s254_s16 = sshll.u32 %s253_s15, 4  ;;  %s246_s17 = scalar_lea.vmem [#allocation2], %s2309_s12  ;;  %s255_s16 = int_to_ptr.hbm [resolvable:$true] %s254_s16 }
   0xf   : > { %s256_s18 = sshll.u32 %s246_s17, 4  ;;  %p2702_p9 = pnand %p2705_p8, %p3172_p3  ;;  %s257_s18 = int_to_ptr.vmem [resolvable:$true] %s256_s18 }
  0x10   : > { %p2312_p10 = scmp.ge.s32.totalorder %s3096_s26, 1  ;;  %p264_p11 = scmp.lt.s32.totalorder %s3096_s26, 3 }
  0x11   : > { %s243_s19 = scalar_lea.sflag [#allocation3], %s242_s10  ;;  %s3098_s20 = smov 256  }
  0x12   : > { %s3099_s21 = smov 16   ;;  %p265_p12 = pnand %p2312_p10, %p264_p11 }
  0x13   : > { %2704 = dma.hbm_to_vmem [thread:$0]  (!%p2702_p9), %s255_s16, 2048, %s257_s18, %s243_s19, %s3098_s20, %s3098_s20, %s3099_s21  }
  0x14   : > { %268 = sbr.rel (%p265_p12) target bundleno = 741 (0x2e5), region = 44 }
  0x19   : > { %s270_s27 = sand.u32 1, %s3080_s22  }
  0x1a   : > { %s2313_s29 = sshll.u32 %s270_s27, 7  ;;  %s271_s7 = scalar_lea.sflag [#allocation3], %s270_s27 }
  0x1b   : > { %s3197_s11 = scalar_lea.vmem [#allocation2], %s2313_s29 }
  0x1c   : > { %3071 = dma.done.wait (%p3179_p7), %s271_s7, 2048  }
  0x1d   : > { %3073 = vsyncadd (%p3179_p7), %s271_s7, 4294965248  ;;  %p318_p13 = scmp.lt.s32.totalorder %s3088_s24, 1  ;;  %v3100_v0 = vmov 0   ;;  %v409_v45 = vld [vmem:[%s4526_s5 + $0x70] sm:$0xff]  ;;  %v407_v47 = vld [vmem:[%s4526_s5 + $0x60] sm:$0xff]  ;;  %vm679_vm0 = vcmask 523264  }
  0x1e   : > { %2757 = vset.pattern.permute.xlu0 %v3100_v0  ;;  %2758 = vset.pattern.permute.xlu1 %v3100_v0  ;;  %v405_v51 = vld [vmem:[%s4526_s5 + $0x50] sm:$0xff]  ;;  %v2675_v52 = vld [vmem:[%s4523_s2] sm:$0xff]  ;;  %v410_v53 = vld [vmem:[%s4526_s5 + $0x78] sm:$0xff] }
  0x1f   : > { %s4714_s24 = smov (!%p318_p13, %s3088_s24), 1  ;;  %2759 = vset.pattern.permute.xlu2 %v3100_v0  ;;  %491 = vperm.xlu0 %2757, %v409_v45   ;;  %v408_v54 = vld [vmem:[%s4526_s5 + $0x68] sm:$0xff]  ;;  %v406_v55 = vld [vmem:[%s4526_s5 + $0x58] sm:$0xff]  ;;  %v403_v56 = vld [vmem:[%s4526_s5 + $0x40] sm:$0xff] }
  0x20   : > { %s2641_s30 = sshll.u32 %s4714_s24, 7  ;;  %481 = vperm.xlu1 %2758, %v407_v47   ;;  %471 = vperm.xlu2 %2759, %v405_v51   ;;  %v404_v57 = vld [vmem:[%s4526_s5 + $0x48] sm:$0xff]  ;;  %v395_v58 = vld [vmem:[%s4526_s5] sm:$0xff]  ;;  %v397_v61 = vld [vmem:[%s4526_s5 + $0x10] sm:$0xff]  ;;  %s2642_s18 = sshll.u32 %s4714_s24, 8 }
  0x21   : > { %s3211_s13 = scalar_lea.vmem %s4521_s0, %s2641_s30  ;;  %v2676_v59 = vld [vmem:[%s4523_s2 + $0x8] sm:$0xff]  ;;  %v398_v62 = vld [vmem:[%s4526_s5 + $0x18] sm:$0xff]  ;;  %v399_v63 = vld [vmem:[%s4526_s5 + $0x20] sm:$0xff]  ;;  %s4305_s20 = scalar_lea.vmem %s4527_s6, %s2642_s18 }
  0x22   : > { %v2416_v1 = vld [vmem:[%s3211_s13 + $0x60] sm:$0xf]  ;;  %v2657_v2 = vld [vmem:[%s3211_s13 + $0x6c] sm:$0xf0]  ;;  %v2655_v3 = vld [vmem:[%s3211_s13 + $0x64] sm:$0xf] }
  0x23   : > { %v2417_v4 = vor.u32 %v2657_v2, %v2416_v1  ;;  %v2418_v5 = vld [vmem:[%s3211_s13 + $0x70] sm:$0xf0]  ;;  %v2424_v6 = vld [vmem:[%s3211_s13 + $0x68] sm:$0xf]  ;;  %v2658_v7 = vld [vmem:[%s3211_s13 + $0x74] sm:$0xf0] }
  0x24   : > { %v2421_v8 = vor.u32 %v2655_v3, %v2418_v5  ;;  %v2425_v9 = vor.u32 %v2658_v7, %v2424_v6  ;;  %v2656_v10 = vld [vmem:[%s3211_s13 + $0x6c] sm:$0xf]  ;;  %v2426_v11 = vld [vmem:[%s3211_s13 + $0x78] sm:$0xf0]  ;;  %v2400_v12 = vld [vmem:[%s3211_s13 + $0x40] sm:$0xf] }
  0x25   : > { %720 = vmatpush.bf16.msra.mxu0 %v2417_v4  ;;  %v2429_v13 = vor.u32 %v2656_v10, %v2426_v11  ;;  %v2653_v14 = vld [vmem:[%s3211_s13 + $0x4c] sm:$0xf0]  ;;  %v2651_v15 = vld [vmem:[%s3211_s13 + $0x44] sm:$0xf]  ;;  %v2402_v16 = vld [vmem:[%s3211_s13 + $0x50] sm:$0xf0] }
  0x26   : > { %789 = vmatpush.bf16.msra.mxu1 %v2421_v8  ;;  %858 = vmatpush.bf16.msra.mxu2 %v2425_v9  ;;  %v2401_v17 = vor.u32 %v2653_v14, %v2400_v12  ;;  %v2405_v18 = vor.u32 %v2651_v15, %v2402_v16  ;;  %v2408_v19 = vld [vmem:[%s3211_s13 + $0x48] sm:$0xf]  ;;  %v2654_v20 = vld [vmem:[%s3211_s13 + $0x54] sm:$0xf0]  ;;  %v2652_v21 = vld [vmem:[%s3211_s13 + $0x4c] sm:$0xf] }
  0x27   : > { %927 = vmatpush.bf16.msra.mxu3 %v2429_v13  ;;  %v2409_v22 = vor.u32 %v2654_v20, %v2408_v19  ;;  %v2410_v23 = vld [vmem:[%s3211_s13 + $0x58] sm:$0xf0]  ;;  %v2384_v24 = vld [vmem:[%s3211_s13 + $0x20] sm:$0xf]  ;;  %v2649_v25 = vld [vmem:[%s3211_s13 + $0x2c] sm:$0xf0]  ;;  %496 = vperm.xlu0 %2757, %v410_v53  }
  0x28   : > { %v2413_v26 = vor.u32 %v2652_v21, %v2410_v23  ;;  %v2647_v27 = vld [vmem:[%s3211_s13 + $0x24] sm:$0xf]  ;;  %v2386_v28 = vld [vmem:[%s3211_s13 + $0x30] sm:$0xf0]  ;;  %v2392_v29 = vld [vmem:[%s3211_s13 + $0x28] sm:$0xf]  ;;  %v2385_v30 = vor.u32 %v2649_v25, %v2384_v24  ;;  %486 = vperm.xlu1 %2758, %v408_v54   ;;  %476 = vperm.xlu2 %2759, %v406_v55  }
  0x29   : > { %721 = vmatpush.bf16.msra.mxu0 %v2401_v17  ;;  %v2650_v31 = vld [vmem:[%s3211_s13 + $0x34] sm:$0xf0]  ;;  %v2648_v32 = vld [vmem:[%s3211_s13 + $0x2c] sm:$0xf]  ;;  %v2394_v33 = vld [vmem:[%s3211_s13 + $0x38] sm:$0xf0]  ;;  %v2389_v34 = vor.u32 %v2647_v27, %v2386_v28 }
  0x2a   : > { %790 = vmatpush.bf16.msra.mxu1 %v2405_v18  ;;  %859 = vmatpush.bf16.msra.mxu2 %v2409_v22  ;;  %v2393_v35 = vor.u32 %v2650_v31, %v2392_v29  ;;  %v2368_v36 = vld [vmem:[%s3211_s13] sm:$0xf]  ;;  %v2645_v37 = vld [vmem:[%s3211_s13 + $0xc] sm:$0xf0]  ;;  %v2643_v38 = vld [vmem:[%s3211_s13 + $0x4] sm:$0xf]  ;;  %v2397_v39 = vor.u32 %v2648_v32, %v2394_v33 }
  0x2b   : > { %928 = vmatpush.bf16.msra.mxu3 %v2413_v26  ;;  %v2370_v40 = vld [vmem:[%s3211_s13 + $0x10] sm:$0xf0]  ;;  %v2376_v41 = vld [vmem:[%s3211_s13 + $0x8] sm:$0xf]  ;;  %v2646_v42 = vld [vmem:[%s3211_s13 + $0x14] sm:$0xf0]  ;;  %v2369_v46 = vor.u32 %v2645_v37, %v2368_v36 }
  0x2c   : > { %v2644_v43 = vld [vmem:[%s3211_s13 + $0xc] sm:$0xf]  ;;  %v2378_v44 = vld [vmem:[%s3211_s13 + $0x18] sm:$0xf0]  ;;  %v2373_v48 = vor.u32 %v2643_v38, %v2370_v40  ;;  %v2377_v49 = vor.u32 %v2646_v42, %v2376_v41  ;;  %v2677_v1 = vld [vmem:[%s4523_s2 + $0x10] sm:$0xff] }
  0x2d   : > { %722 = vmatpush.bf16.msra.mxu0 %v2385_v30  ;;  %v2381_v50 = vor.u32 %v2644_v43, %v2378_v44  ;;  %v396_v60 = vld [vmem:[%s4526_s5 + $0x8] sm:$0xff]  ;;  %v402_v2 = vld [vmem:[%s4526_s5 + $0x38] sm:$0xff]  ;;  %v401_v4 = vld [vmem:[%s4526_s5 + $0x30] sm:$0xff] }
  0x2e   : > { %791 = vmatpush.bf16.msra.mxu1 %v2389_v34  ;;  %860 = vmatpush.bf16.msra.mxu2 %v2393_v35  ;;  %v400_v0 = vld [vmem:[%s4526_s5 + $0x28] sm:$0xff]  ;;  %v2678_v3 = vld [vmem:[%s4523_s2 + $0x18] sm:$0xff]  ;;  %v2679_v5 = vld [vmem:[%s4523_s2 + $0x20] sm:$0xff] }
  0x2f   : > { %929 = vmatpush.bf16.msra.mxu3 %v2397_v39  ;;  %461 = vperm.xlu0 %2757, %v403_v56   ;;  %v2680_v6 = vld [vmem:[%s4523_s2 + $0x28] sm:$0xff]  ;;  %v2674_v8 = vld [vmem:[%s3197_s11 + $0x74] sm:$0xf0]  ;;  %v2570_v11 = vld [vmem:[%s3197_s11 + $0x78] sm:$0xf0] }
  0x30   : > { %466 = vperm.xlu1 %2758, %v404_v57   ;;  %421 = vperm.xlu2 %2759, %v395_v58   ;;  %v2568_v7 = vld [vmem:[%s3197_s11 + $0x68] sm:$0xf]  ;;  %v2672_v9 = vld [vmem:[%s3197_s11 + $0x6c] sm:$0xf]  ;;  %v2681_v13 = vld [vmem:[%s4523_s2 + $0x30] sm:$0xff] }
  0x31   : > { %723 = vmatpush.bf16.msra.mxu0 %v2369_v46  ;;  %v2569_v10 = vor.u32 %v2674_v8, %v2568_v7  ;;  %v2573_v12 = vor.u32 %v2672_v9, %v2570_v11  ;;  %v2560_v14 = vld [vmem:[%s3197_s11 + $0x60] sm:$0xf]  ;;  %v2673_v15 = vld [vmem:[%s3197_s11 + $0x6c] sm:$0xf0]  ;;  %v2671_v16 = vld [vmem:[%s3197_s11 + $0x64] sm:$0xf] }
  0x32   : > { %792 = vmatpush.bf16.msra.mxu1 %v2373_v48  ;;  %861 = vmatpush.bf16.msra.mxu2 %v2377_v49  ;;  %v2561_v17 = vor.u32 %v2673_v15, %v2560_v14  ;;  %v2562_v18 = vld [vmem:[%s3197_s11 + $0x70] sm:$0xf0]  ;;  %v2682_v20 = vld [vmem:[%s4523_s2 + $0x38] sm:$0xff]  ;;  %v411_v21 = vld [vmem:[%s4526_s5 + $0x80] sm:$0xff] }
  0x33   : > { %930 = vmatpush.bf16.msra.mxu3 %v2381_v50  ;;  %v2565_v19 = vor.u32 %v2671_v16, %v2562_v18  ;;  %v2683_v22 = vld [vmem:[%s4523_s2 + $0x40] sm:$0xff]  ;;  %v413_v25 = vld [vmem:[%s4526_s5 + $0x90] sm:$0xff]  ;;  %v2552_v26 = vld [vmem:[%s3197_s11 + $0x48] sm:$0xf] }
  0x34   : > { %2430 = vmatmul.msk.bf16.vlgmr.msra.gmra.mxu0 %vm679_vm0, %v2675_v52  ;;  %v2670_v27 = vld [vmem:[%s3197_s11 + $0x54] sm:$0xf0]  ;;  %v2668_v29 = vld [vmem:[%s3197_s11 + $0x4c] sm:$0xf]  ;;  %v2554_v30 = vld [vmem:[%s3197_s11 + $0x58] sm:$0xf0] }
  0x35   : > { %2442 = vmatmul.msk.bf16.vlgmr.msra.gmra.mxu1 %vm679_vm0, %v2675_v52  ;;  %2454 = vmatmul.msk.bf16.vlgmr.msra.gmra.mxu2 %vm679_vm0, %v2675_v52  ;;  %v2553_v28 = vor.u32 %v2670_v27, %v2552_v26  ;;  %v2557_v32 = vor.u32 %v2668_v29, %v2554_v30  ;;  %v414_v36 = vld [vmem:[%s4526_s5 + $0x98] sm:$0xff]  ;;  %v2684_v38 = vld [vmem:[%s4523_s2 + $0x48] sm:$0xff]  ;;  %v2544_v42 = vld [vmem:[%s3197_s11 + $0x40] sm:$0xf] }
  0x36   : > { %2466 = vmatmul.msk.bf16.vlgmr.msra.gmra.mxu3 %vm679_vm0, %v2675_v52  ;;  %1254 = vmatpush.bf16.msrb.mxu2 %v2569_v10  ;;  %v2669_v43 = vld [vmem:[%s3197_s11 + $0x4c] sm:$0xf0]  ;;  %v2667_v44 = vld [vmem:[%s3197_s11 + $0x44] sm:$0xf]  ;;  %v2546_v46 = vld [vmem:[%s3197_s11 + $0x50] sm:$0xf0] }
  0x37   : > { %426 = vperm.xlu0 %2757, %v396_v60   ;;  %1303 = vmatpush.bf16.msrb.mxu3 %v2573_v12  ;;  %v2545_v45 = vor.u32 %v2669_v43, %v2544_v42  ;;  %v412_v47 = vld [vmem:[%s4526_s5 + $0x88] sm:$0xff]  ;;  %v2549_v48 = vor.u32 %v2667_v44, %v2546_v46  ;;  %v2528_v54 = vld [vmem:[%s3197_s11 + $0x20] sm:$0xf]  ;;  %v2665_v55 = vld [vmem:[%s3197_s11 + $0x2c] sm:$0xf0] }
  0x38   : > { %431 = vperm.xlu1 %2758, %v397_v61   ;;  %436 = vperm.xlu2 %2759, %v398_v62   ;;  %v416_v53 = vld [vmem:[%s4526_s5 + $0xa8] sm:$0xff]  ;;  %v2529_v56 = vor.u32 %v2665_v55, %v2528_v54  ;;  %v2663_v57 = vld [vmem:[%s3197_s11 + $0x24] sm:$0xf]  ;;  %v2530_v58 = vld [vmem:[%s3197_s11 + $0x30] sm:$0xf0] }
  0x39   : > { %1156 = vmatpush.bf16.msrb.mxu0 %v2561_v17  ;;  %1205 = vmatpush.bf16.msrb.mxu1 %v2565_v19  ;;  %v2533_v60 = vor.u32 %v2663_v57, %v2530_v58  ;;  %v2666_v61 = vld [vmem:[%s3197_s11 + $0x34] sm:$0xf0]  ;;  %v2664_v62 = vld [vmem:[%s3197_s11 + $0x2c] sm:$0xf]  ;;  %v2514_v10 = vld [vmem:[%s3197_s11 + $0x10] sm:$0xf0] }
  0x3a   : > { %1255 = vmatpush.bf16.msrb.mxu2 %v2553_v28  ;;  %v2520_v11 = vld [vmem:[%s3197_s11 + $0x8] sm:$0xf]  ;;  %v2662_v12 = vld [vmem:[%s3197_s11 + $0x14] sm:$0xf0]  ;;  %v2660_v16 = vld [vmem:[%s3197_s11 + $0xc] sm:$0xf] }
  0x3b   : > { %1304 = vmatpush.bf16.msrb.mxu3 %v2557_v32  ;;  %v2521_v15 = vor.u32 %v2662_v12, %v2520_v11  ;;  %v2522_v17 = vld [vmem:[%s3197_s11 + $0x18] sm:$0xf0]  ;;  %v417_v19 = vld [vmem:[%s4526_s5 + $0xb0] sm:$0xff]  ;;  %v415_v26 = vld [vmem:[%s4526_s5 + $0xa0] sm:$0xff] }
  0x3c   : > { %v2525_v18 = vor.u32 %v2660_v16, %v2522_v17  ;;  %v2686_v28 = vld [vmem:[%s4523_s2 + $0x58] sm:$0xff] }
  0x3d   : > { %1157 = vmatpush.bf16.msrb.mxu0 %v2545_v45  ;;  %1206 = vmatpush.bf16.msrb.mxu1 %v2549_v48  ;;  %v2687_v45 = vld [vmem:[%s4524_s3] sm:$0xff]  ;;  %v2690_v17 = vld [vmem:[%s4524_s3 + $0x18] sm:$0xff] }
  0x3f   : > { %441 = vperm.xlu0 %2757, %v399_v63   ;;  %v2538_v63 = vld [vmem:[%s3197_s11 + $0x38] sm:$0xf0] }
  0x40   : > { %446 = vperm.xlu1 %2758, %v400_v0   ;;  %451 = vperm.xlu2 %2759, %v401_v4   ;;  %v2512_v4 = vld [vmem:[%s3197_s11] sm:$0xf] }
  0x41   : > { %1158 = vmatpush.bf16.msrb.mxu0 %v2529_v56  ;;  %1207 = vmatpush.bf16.msrb.mxu1 %v2533_v60 }
  0x44   : > { %2431 = vmatmul.msk.bf16.gmra.mxu0 %vm679_vm0, %v2676_v59 }
  0x45   : > { %2443 = vmatmul.msk.bf16.gmra.mxu1 %vm679_vm0, %v2676_v59  ;;  %2455 = vmatmul.msk.bf16.gmra.mxu2 %vm679_vm0, %v2676_v59 }
  0x46   : > { %2467 = vmatmul.msk.bf16.gmra.mxu3 %vm679_vm0, %v2676_v59  ;;  %v2536_v59 = vld [vmem:[%s3197_s11 + $0x28] sm:$0xf] }
  0x47   : > { %456 = vperm.xlu0 %2757, %v402_v2   ;;  %v2537_v0 = vor.u32 %v2666_v61, %v2536_v59  ;;  %v2685_v2 = vld [vmem:[%s4523_s2 + $0x50] sm:$0xff]  ;;  %v2688_v59 = vld [vmem:[%s4524_s3 + $0x8] sm:$0xff] }
  0x48   : > { %501 = vperm.xlu1 %2758, %v411_v21   ;;  %506 = vperm.xlu2 %2759, %v412_v47  }
  0x49   : > { %1256 = vmatpush.bf16.msrb.mxu2 %v2537_v0 }
  0x4d   : > { %1257 = vmatpush.bf16.msrb.mxu2 %v2521_v15 }
  0x4f   : > { %511 = vperm.xlu0 %2757, %v413_v25  }
  0x50   : > { %516 = vperm.xlu1 %2758, %v414_v36   ;;  %521 = vperm.xlu2 %2759, %v415_v26  }
  0x54   : > { %2432 = vmatmul.msk.bf16.gmra.mxu0 %vm679_vm0, %v2677_v1 }
  0x55   : > { %2444 = vmatmul.msk.bf16.gmra.mxu1 %vm679_vm0, %v2677_v1  ;;  %2456 = vmatmul.msk.bf16.gmra.mxu2 %vm679_vm0, %v2677_v1 }
  0x56   : > { %2468 = vmatmul.msk.bf16.gmra.mxu3 %vm679_vm0, %v2677_v1  ;;  %v2541_v1 = vor.u32 %v2664_v62, %v2538_v63 }
  0x57   : > { %526 = vperm.xlu0 %2757, %v416_v53   ;;  %v418_v53 = vld [vmem:[%s4526_s5 + $0xb8] sm:$0xff] }
  0x58   : > { %1305 = vmatpush.bf16.msrb.mxu3 %v2541_v1  ;;  %531 = vperm.xlu1 %2758, %v417_v19  }
  0x59   : > { %536 = vperm.xlu2 %2759, %v418_v53  }
  0x5c   : > { %1306 = vmatpush.bf16.msrb.mxu3 %v2525_v18 }
  0x64   : > { %2433 = vmatmul.msk.bf16.gmra.mxu0 %vm679_vm0, %v2678_v3 }
  0x65   : > { %2445 = vmatmul.msk.bf16.gmra.mxu1 %vm679_vm0, %v2678_v3  ;;  %2457 = vmatmul.msk.bf16.gmra.mxu2 %vm679_vm0, %v2678_v3 }
  0x66   : > { %2469 = vmatmul.msk.bf16.gmra.mxu3 %vm679_vm0, %v2678_v3 }
  0x74   : > { %2434 = vmatmul.msk.bf16.gmra.mxu0 %vm679_vm0, %v2679_v5 }
  0x75   : > { %2446 = vmatmul.msk.bf16.gmra.mxu1 %vm679_vm0, %v2679_v5  ;;  %2458 = vmatmul.msk.bf16.gmra.mxu2 %vm679_vm0, %v2679_v5 }
  0x76   : > { %2470 = vmatmul.msk.bf16.gmra.mxu3 %vm679_vm0, %v2679_v5  ;;  %v2661_v5 = vld [vmem:[%s3197_s11 + $0xc] sm:$0xf0] }
  0x77   : > { %v2513_v9 = vor.u32 %v2661_v5, %v2512_v4  ;;  %v2689_v5 = vld [vmem:[%s4524_s3 + $0x10] sm:$0xff] }
  0x79   : > { %1159 = vmatpush.bf16.msrb.mxu0 %v2513_v9 }
  0x84   : > { %2435 = vmatmul.msk.bf16.gmra.mxu0 %vm679_vm0, %v2680_v6 }
  0x85   : > { %2447 = vmatmul.msk.bf16.gmra.mxu1 %vm679_vm0, %v2680_v6  ;;  %2459 = vmatmul.msk.bf16.gmra.mxu2 %vm679_vm0, %v2680_v6 }
  0x86   : > { %2471 = vmatmul.msk.bf16.gmra.mxu3 %vm679_vm0, %v2680_v6  ;;  %v2659_v6 = vld [vmem:[%s3197_s11 + $0x4] sm:$0xf] }
  0x87   : > { %v2517_v14 = vor.u32 %v2659_v6, %v2514_v10 }
  0x89   : > { %1208 = vmatpush.bf16.msrb.mxu1 %v2517_v14 }
  0x94   : > { %2436 = vmatmul.msk.bf16.gmra.mxu0 %vm679_vm0, %v2681_v13 }
  0x95   : > { %2448 = vmatmul.msk.bf16.gmra.mxu1 %vm679_vm0, %v2681_v13  ;;  %2460 = vmatmul.msk.bf16.gmra.mxu2 %vm679_vm0, %v2681_v13 }
  0x96   : > { %2472 = vmatmul.msk.bf16.gmra.mxu3 %vm679_vm0, %v2681_v13 }
  0xa4   : > { %2437 = vmatmul.msk.bf16.gmra.mxu0 %vm679_vm0, %v2682_v20 }
  0xa5   : > { %2449 = vmatmul.msk.bf16.gmra.mxu1 %vm679_vm0, %v2682_v20  ;;  %2461 = vmatmul.msk.bf16.gmra.mxu2 %vm679_vm0, %v2682_v20 }
  0xa6   : > { %2473 = vmatmul.msk.bf16.gmra.mxu3 %vm679_vm0, %v2682_v20 }
  0xb1   : > { %v3363_v23 = vpop.f32.mrf.mxu0 }
  0xb2   : > { %v3365_v24 = vpop.f32.mrf.mxu1 }
  0xb4   : > { %2438 = vmatmul.msk.bf16.gmra.mxu0 %vm679_vm0, %v2683_v22 }
  0xb5   : > { %2450 = vmatmul.msk.bf16.gmra.mxu1 %vm679_vm0, %v2683_v22  ;;  %2462 = vmatmul.msk.bf16.gmra.mxu2 %vm679_vm0, %v2683_v22 }
  0xb6   : > { %2474 = vmatmul.msk.bf16.gmra.mxu3 %vm679_vm0, %v2683_v22 }
  0xb8   : > { %v3378_v31 = vpop.f32.mrf.mxu2 }
  0xb9   : > { %v3380_v33 = vpop.f32.mrf.mxu3  ;;  %v3382_v34 = vpop.f32.mrf.mxu0 }
  0xba   : > { %v3384_v35 = vpop.f32.mrf.mxu1 }
  0xc0   : > { %v3389_v37 = vpop.f32.mrf.mxu2 }
  0xc1   : > { %v3394_v39 = vpop.f32.mrf.mxu3  ;;  %v3396_v40 = vpop.f32.mrf.mxu0 }
  0xc2   : > { %v3398_v41 = vpop.f32.mrf.mxu1 }
  0xc4   : > { %2439 = vmatmul.msk.bf16.gmra.mxu0 %vm679_vm0, %v2684_v38 }
  0xc5   : > { %2451 = vmatmul.msk.bf16.gmra.mxu1 %vm679_vm0, %v2684_v38  ;;  %2463 = vmatmul.msk.bf16.gmra.mxu2 %vm679_vm0, %v2684_v38 }
  0xc6   : > { %2475 = vmatmul.msk.bf16.gmra.mxu3 %vm679_vm0, %v2684_v38 }
  0xc8   : > { %v3411_v49 = vpop.f32.mrf.mxu2 }
  0xc9   : > { %v3413_v50 = vpop.f32.mrf.mxu3  ;;  %v3415_v51 = vpop.f32.mrf.mxu0 }
  0xca   : > { %v3417_v52 = vpop.f32.mrf.mxu1 }
  0xd0   : > { %v3433_v3 = vpop.f32.mrf.mxu2 }
  0xd1   : > { %v3438_v7 = vpop.f32.mrf.mxu3  ;;  %v3440_v8 = vpop.f32.mrf.mxu0 }
  0xd2   : > { %v3445_v13 = vpop.f32.mrf.mxu1 }
  0xd4   : > { %2440 = vmatmul.msk.bf16.gmra.mxu0 %vm679_vm0, %v2685_v2 }
  0xd5   : > { %2452 = vmatmul.msk.bf16.gmra.mxu1 %vm679_vm0, %v2685_v2  ;;  %2464 = vmatmul.msk.bf16.gmra.mxu2 %vm679_vm0, %v2685_v2 }
  0xd6   : > { %2476 = vmatmul.msk.bf16.gmra.mxu3 %vm679_vm0, %v2685_v2 }
  0xd8   : > { %v3456_v20 = vpop.f32.mrf.mxu2 }
  0xd9   : > { %v3458_v21 = vpop.f32.mrf.mxu3  ;;  %v3460_v22 = vpop.f32.mrf.mxu0 }
  0xda   : > { %v3462_v25 = vpop.f32.mrf.mxu1 }
  0xe0   : > { %v3467_v27 = vpop.f32.mrf.mxu2 }
  0xe1   : > { %v3472_v29 = vpop.f32.mrf.mxu3  ;;  %v3474_v30 = vpop.f32.mrf.mxu0 }
  0xe2   : > { %v3476_v32 = vpop.f32.mrf.mxu1 }
  0xe4   : > { %2441 = vmatmul.msk.bf16.gmra.mxu0 %vm679_vm0, %v2686_v28 }
  0xe5   : > { %2453 = vmatmul.msk.bf16.gmra.mxu1 %vm679_vm0, %v2686_v28  ;;  %2465 = vmatmul.msk.bf16.gmra.mxu2 %vm679_vm0, %v2686_v28 }
  0xe6   : > { %2477 = vmatmul.msk.bf16.gmra.mxu3 %vm679_vm0, %v2686_v28 }
  0xe8   : > { %v3482_v36 = vpop.f32.mrf.mxu2 }
  0xe9   : > { %v3484_v38 = vpop.f32.mrf.mxu3  ;;  %v3486_v42 = vpop.f32.mrf.mxu0 }
  0xea   : > { %v3488_v43 = vpop.f32.mrf.mxu1 }
  0xf0   : > { %v3490_v44 = vpop.f32.mrf.mxu2 }
  0xf1   : > { %v3495_v46 = vpop.f32.mrf.mxu3  ;;  %v3497_v47 = vpop.f32.mrf.mxu0 }
  0xf2   : > { %v3499_v48 = vpop.f32.mrf.mxu1 }
  0xf4   : > { %2574 = vmatmul.msk.bf16.vlgmr.msrb.gmra.mxu0 %vm679_vm0, %v2687_v45 }
  0xf5   : > { %2582 = vmatmul.msk.bf16.vlgmr.msrb.gmra.mxu1 %vm679_vm0, %v2687_v45  ;;  %2590 = vmatmul.msk.bf16.vlgmr.msrb.gmra.mxu2 %vm679_vm0, %v2687_v45 }
  0xf6   : > { %2598 = vmatmul.msk.bf16.vlgmr.msrb.gmra.mxu3 %vm679_vm0, %v2687_v45 }
  0xf8   : > { %v3508_v54 = vpop.f32.mrf.mxu2 }
  0xf9   : > { %v3510_v55 = vpop.f32.mrf.mxu3  ;;  %v3512_v56 = vpop.f32.mrf.mxu0 }
  0xfa   : > { %v3514_v57 = vpop.f32.mrf.mxu1 }
 0x100   : > { %v3516_v58 = vpop.f32.mrf.mxu2 }
 0x101   : > { %v3521_v60 = vpop.f32.mrf.mxu3  ;;  %v3523_v61 = vpop.f32.mrf.mxu0 }
 0x102   : > { %v3525_v62 = vpop.f32.mrf.mxu1 }
 0x104   : > { %2575 = vmatmul.msk.bf16.gmra.mxu0 %vm679_vm0, %v2688_v59 }
 0x105   : > { %2583 = vmatmul.msk.bf16.gmra.mxu1 %vm679_vm0, %v2688_v59  ;;  %2591 = vmatmul.msk.bf16.gmra.mxu2 %vm679_vm0, %v2688_v59 }
 0x106   : > { %2599 = vmatmul.msk.bf16.gmra.mxu3 %vm679_vm0, %v2688_v59 }
 0x108   : > { %v3531_v63 = vpop.f32.mrf.mxu2 }
 0x109   : > { %v3533_v0 = vpop.f32.mrf.mxu3  ;;  %v3535_v1 = vpop.f32.mrf.mxu0 }
 0x10a   : > { %v3537_v2 = vpop.f32.mrf.mxu1 }
 0x110   : > { %v3539_v4 = vpop.f32.mrf.mxu2 }
 0x111   : > { %4534 = vst [vmem:[#allocation5_spill] sm:$0xff] %v3539_v4  ;;  %v3544_v6 = vpop.f32.mrf.mxu3  ;;  %v3546_v9 = vpop.f32.mrf.mxu0 }
 0x112   : > { %4535 = vst [vmem:[#allocation6_spill] sm:$0xff] %v3544_v6  ;;  %v3548_v10 = vpop.f32.mrf.mxu1 }
 0x113   : > { %4536 = vst [vmem:[#allocation7_spill] sm:$0xff] %v3546_v9 }
 0x114   : > { %4537 = vst [vmem:[#allocation8_spill] sm:$0xff] %v3548_v10  ;;  %2576 = vmatmul.msk.bf16.gmra.mxu0 %vm679_vm0, %v2689_v5 }
 0x115   : > { %2584 = vmatmul.msk.bf16.gmra.mxu1 %vm679_vm0, %v2689_v5  ;;  %2592 = vmatmul.msk.bf16.gmra.mxu2 %vm679_vm0, %v2689_v5 }
 0x116   : > { %2600 = vmatmul.msk.bf16.gmra.mxu3 %vm679_vm0, %v2689_v5 }
 0x118   : > { %v3554_v11 = vpop.f32.mrf.mxu2 }
 0x119   : > { %4538 = vst [vmem:[#allocation9_spill] sm:$0xff] %v3554_v11  ;;  %v3556_v12 = vpop.f32.mrf.mxu3  ;;  %v3558_v14 = vpop.f32.mrf.mxu0 }
 0x11a   : > { %4539 = vst [vmem:[#allocation10_spill] sm:$0xff] %v3556_v12  ;;  %v3560_v15 = vpop.f32.mrf.mxu1 }
 0x11b   : > { %4540 = vst [vmem:[#allocation11_spill] sm:$0xff] %v3558_v14 }
 0x11c   : > { %4541 = vst [vmem:[#allocation12_spill] sm:$0xff] %v3560_v15 }
 0x120   : > { %v3562_v16 = vpop.f32.mrf.mxu2 }
 0x121   : > { %4542 = vst [vmem:[#allocation13_spill] sm:$0xff] %v3562_v16  ;;  %v3567_v18 = vpop.f32.mrf.mxu3  ;;  %v3569_v19 = vpop.f32.mrf.mxu0 }
 0x122   : > { %4543 = vst [vmem:[#allocation14_spill] sm:$0xff] %v3567_v18  ;;  %v3571_v26 = vpop.f32.mrf.mxu1 }
 0x123   : > { %4544 = vst [vmem:[#allocation15_spill] sm:$0xff] %v3569_v19 }
 0x124   : > { %4545 = vst [vmem:[#allocation16_spill] sm:$0xff] %v3571_v26  ;;  %2577 = vmatmul.msk.bf16.gmra.mxu0 %vm679_vm0, %v2690_v17  ;;  %v2691_v26 = vld [vmem:[%s4524_s3 + $0x20] sm:$0xff] }
 0x125   : > { %2585 = vmatmul.msk.bf16.gmra.mxu1 %vm679_vm0, %v2690_v17  ;;  %2593 = vmatmul.msk.bf16.gmra.mxu2 %vm679_vm0, %v2690_v17 }
 0x126   : > { %2601 = vmatmul.msk.bf16.gmra.mxu3 %vm679_vm0, %v2690_v17 }
 0x128   : > { %v3577_v28 = vpop.f32.mrf.mxu2 }
 0x129   : > { %4546 = vst [vmem:[#allocation17_spill] sm:$0xff] %v3577_v28  ;;  %v3579_v45 = vpop.f32.mrf.mxu3  ;;  %v3581_v53 = vpop.f32.mrf.mxu0 }
 0x12a   : > { %4547 = vst [vmem:[#allocation18_spill] sm:$0xff] %v3579_v45  ;;  %v3583_v59 = vpop.f32.mrf.mxu1 }
 0x12b   : > { %4548 = vst [vmem:[#allocation19_spill] sm:$0xff] %v3581_v53 }
 0x12c   : > { %4549 = vst [vmem:[#allocation20_spill] sm:$0xff] %v3583_v59 }
 0x130   : > { %v3585_v5 = vpop.f32.mrf.mxu2 }
 0x131   : > { %4550 = vst [vmem:[#allocation21_spill] sm:$0xff] %v3585_v5  ;;  %v3590_v19 = vpop.f32.mrf.mxu3  ;;  %v3592_v18 = vpop.f32.mrf.mxu0 }
 0x132   : > { %4551 = vst [vmem:[#allocation22_spill] sm:$0xff] %v3590_v19  ;;  %v3594_v16 = vpop.f32.mrf.mxu1 }
 0x133   : > { %4552 = vst [vmem:[#allocation23_spill] sm:$0xff] %v3592_v18 }
 0x134   : > { %4553 = vst [vmem:[#allocation24_spill] sm:$0xff] %v3594_v16  ;;  %2578 = vmatmul.msk.bf16.gmra.mxu0 %vm679_vm0, %v2691_v26  ;;  %v2692_v16 = vld [vmem:[%s4524_s3 + $0x28] sm:$0xff] }
 0x135   : > { %2586 = vmatmul.msk.bf16.gmra.mxu1 %vm679_vm0, %v2691_v26  ;;  %2594 = vmatmul.msk.bf16.gmra.mxu2 %vm679_vm0, %v2691_v26 }
 0x136   : > { %2602 = vmatmul.msk.bf16.gmra.mxu3 %vm679_vm0, %v2691_v26 }
 0x138   : > { %v3600_v17 = vpop.f32.mrf.mxu2 }
 0x139   : > { %4554 = vst [vmem:[#allocation25_spill] sm:$0xff] %v3600_v17  ;;  %v3602_v5 = vpop.f32.mrf.mxu3  ;;  %v3604_v59 = vpop.f32.mrf.mxu0 }
 0x13a   : > { %4555 = vst [vmem:[#allocation26_spill] sm:$0xff] %v3602_v5  ;;  %v3606_v53 = vpop.f32.mrf.mxu1 }
 0x13b   : > { %4556 = vst [vmem:[#allocation27_spill] sm:$0xff] %v3604_v59 }
 0x13c   : > { %4557 = vst [vmem:[#allocation28_spill] sm:$0xff] %v3606_v53 }
 0x140   : > { %v3608_v19 = vpop.f32.mrf.mxu2 }
 0x141   : > { %4558 = vst [vmem:[#allocation29_spill] sm:$0xff] %v3608_v19  ;;  %v3613_v18 = vpop.f32.mrf.mxu3  ;;  %v3615_v45 = vpop.f32.mrf.mxu0 }
 0x142   : > { %4559 = vst [vmem:[#allocation30_spill] sm:$0xff] %v3613_v18  ;;  %v3617_v28 = vpop.f32.mrf.mxu1 }
 0x143   : > { %4560 = vst [vmem:[#allocation31_spill] sm:$0xff] %v3615_v45 }
 0x144   : > { %4561 = vst [vmem:[#allocation32_spill] sm:$0xff] %v3617_v28  ;;  %2579 = vmatmul.msk.bf16.gmra.mxu0 %vm679_vm0, %v2692_v16  ;;  %v2693_v28 = vld [vmem:[%s4524_s3 + $0x30] sm:$0xff] }
 0x145   : > { %2587 = vmatmul.msk.bf16.gmra.mxu1 %vm679_vm0, %v2692_v16  ;;  %2595 = vmatmul.msk.bf16.gmra.mxu2 %vm679_vm0, %v2692_v16 }
 0x146   : > { %2603 = vmatmul.msk.bf16.gmra.mxu3 %vm679_vm0, %v2692_v16  ;;  %v3645_v16 = vpop.permute.xlu0 %491 }
 0x147   : > { %4570 = vst [vmem:[#allocation41_spill] sm:$0xff] %v3645_v16 }
 0x148   : > { %v3623_v26 = vpop.f32.mrf.mxu2 }
 0x149   : > { %4562 = vst [vmem:[#allocation33_spill] sm:$0xff] %v3623_v26  ;;  %v3625_v53 = vpop.f32.mrf.mxu3  ;;  %v3627_v59 = vpop.f32.mrf.mxu0 }
 0x14a   : > { %4563 = vst [vmem:[#allocation34_spill] sm:$0xff] %v3625_v53  ;;  %v3629_v19 = vpop.f32.mrf.mxu1 }
 0x14b   : > { %4564 = vst [vmem:[#allocation35_spill] sm:$0xff] %v3627_v59 }
 0x14c   : > { %4565 = vst [vmem:[#allocation36_spill] sm:$0xff] %v3629_v19 }
 0x14e   : > { %v3660_v53 = vpop.permute.xlu0 %496 }
 0x14f   : > { %4576 = vst [vmem:[#allocation47_spill] sm:$0xff] %v3660_v53 }
 0x150   : > { %v3631_v18 = vpop.f32.mrf.mxu2 }
 0x151   : > { %4566 = vst [vmem:[#allocation37_spill] sm:$0xff] %v3631_v18  ;;  %v3636_v45 = vpop.f32.mrf.mxu3  ;;  %v3638_v5 = vpop.f32.mrf.mxu0 }
 0x152   : > { %4567 = vst [vmem:[#allocation38_spill] sm:$0xff] %v3636_v45  ;;  %v3640_v17 = vpop.f32.mrf.mxu1 }
 0x153   : > { %4568 = vst [vmem:[#allocation39_spill] sm:$0xff] %v3638_v5  ;;  %v3656_v5 = vpop.permute.xlu2 %471 }
 0x154   : > { %4569 = vst [vmem:[#allocation40_spill] sm:$0xff] %v3640_v17  ;;  %2580 = vmatmul.msk.bf16.gmra.mxu0 %vm679_vm0, %v2693_v28  ;;  %v3658_v17 = vpop.permute.xlu1 %481 }
 0x155   : > { %2588 = vmatmul.msk.bf16.gmra.mxu1 %vm679_vm0, %v2693_v28  ;;  %2596 = vmatmul.msk.bf16.gmra.mxu2 %vm679_vm0, %v2693_v28  ;;  %4575 = vst [vmem:[#allocation46_spill] sm:$0xff] %v3658_v17 }
 0x156   : > { %2604 = vmatmul.msk.bf16.gmra.mxu3 %vm679_vm0, %v2693_v28  ;;  %v2694_v28 = vld [vmem:[%s4524_s3 + $0x38] sm:$0xff] }
 0x158   : > { %v3648_v19 = vpop.f32.mrf.mxu2 }
 0x159   : > { %4571 = vst [vmem:[#allocation42_spill] sm:$0xff] %v3648_v19  ;;  %v3650_v59 = vpop.f32.mrf.mxu3  ;;  %v3652_v18 = vpop.f32.mrf.mxu0 }
 0x15a   : > { %4572 = vst [vmem:[#allocation43_spill] sm:$0xff] %v3650_v59  ;;  %v3654_v45 = vpop.f32.mrf.mxu1 }
 0x15b   : > { %4573 = vst [vmem:[#allocation44_spill] sm:$0xff] %v3652_v18 }
 0x15c   : > { %4574 = vst [vmem:[#allocation45_spill] sm:$0xff] %v3654_v45  ;;  %v3674_v45 = vpop.permute.xlu2 %476 }
 0x160   : > { %v3662_v26 = vpop.f32.mrf.mxu2 }
 0x161   : > { %4577 = vst [vmem:[#allocation48_spill] sm:$0xff] %v3662_v26  ;;  %v3667_v16 = vpop.f32.mrf.mxu3  ;;  %v3669_v19 = vpop.f32.mrf.mxu0 }
 0x162   : > { %4578 = vst [vmem:[#allocation49_spill] sm:$0xff] %v3667_v16  ;;  %v3671_v59 = vpop.f32.mrf.mxu1 }
 0x163   : > { %4579 = vst [vmem:[#allocation50_spill] sm:$0xff] %v3669_v19  ;;  %v3687_v19 = vpop.permute.xlu0 %461 }
 0x164   : > { %4580 = vst [vmem:[#allocation51_spill] sm:$0xff] %v3671_v59  ;;  %2581 = vmatmul.msk.bf16.gmra.mxu0 %vm679_vm0, %v2694_v28  ;;  %v3689_v59 = vpop.permute.xlu1 %486  ;;  %v422_v15 = vpop.permute.xlu2 %421 }
 0x165   : > { %2589 = vmatmul.msk.bf16.gmra.mxu1 %vm679_vm0, %v2694_v28  ;;  %2597 = vmatmul.msk.bf16.gmra.mxu2 %vm679_vm0, %v2694_v28  ;;  %4585 = vst [vmem:[#allocation56_spill] sm:$0xff] %v3689_v59  ;;  %v726_v12 = vadd.f32 %v3363_v23, %v422_v15  ;;  %v864_v59 = vadd.f32 %v3378_v31, %v422_v15 }
 0x166   : > { %2605 = vmatmul.msk.bf16.gmra.mxu3 %vm679_vm0, %v2694_v28  ;;  %v933_v17 = vadd.f32 %v3380_v33, %v422_v15 }
 0x168   : > { %v3679_v18 = vpop.f32.mrf.mxu2 }
 0x169   : > { %4581 = vst [vmem:[#allocation52_spill] sm:$0xff] %v3679_v18  ;;  %v3681_v26 = vpop.f32.mrf.mxu3  ;;  %v3683_v53 = vpop.f32.mrf.mxu0  ;;  %v795_v18 = vadd.f32 %v3365_v24, %v422_v15 }
 0x16a   : > { %4582 = vst [vmem:[#allocation53_spill] sm:$0xff] %v3681_v26  ;;  %v3685_v16 = vpop.f32.mrf.mxu1 }
 0x16b   : > { %4583 = vst [vmem:[#allocation54_spill] sm:$0xff] %v3683_v53 }
 0x16c   : > { %4584 = vst [vmem:[#allocation55_spill] sm:$0xff] %v3685_v16  ;;  %v427_v16 = vpop.permute.xlu0 %426  ;;  %v3701_v9 = vpop.permute.xlu1 %466 }
 0x16d   : > { %v728_v23 = vadd.f32 %v3382_v34, %v427_v16  ;;  %v797_v24 = vadd.f32 %v3384_v35, %v427_v16  ;;  %v866_v31 = vadd.f32 %v3389_v37, %v427_v16  ;;  %v935_v33 = vadd.f32 %v3394_v39, %v427_v16  ;;  %v437_v37 = vpop.permute.xlu2 %436 }
 0x170   : > { %v3691_v14 = vpop.f32.mrf.mxu2 }
 0x171   : > { %4586 = vst [vmem:[#allocation57_spill] sm:$0xff] %v3691_v14  ;;  %v3694_v11 = vpop.f32.mrf.mxu3  ;;  %v1161_v28 = vpop.f32.mrf.mxu0 }
 0x172   : > { %4587 = vst [vmem:[#allocation58_spill] sm:$0xff] %v3694_v11  ;;  %v3697_v10 = vadd.f32 %v1161_v28, %v726_v12  ;;  %v1210_v26 = vpop.f32.mrf.mxu1 }
 0x173   : > { %v3699_v53 = vadd.f32 %v1210_v26, %v795_v18 }
 0x175   : > { %4588 = vst [vmem:[#allocation59_spill] sm:$0xff] %v3699_v53  ;;  %v432_v53 = vpop.permute.xlu1 %431 }
 0x176   : > { %v731_v34 = vadd.f32 %v3396_v40, %v432_v53  ;;  %v800_v35 = vadd.f32 %v3398_v41, %v432_v53  ;;  %v938_v39 = vadd.f32 %v3413_v50, %v432_v53  ;;  %v733_v40 = vadd.f32 %v3415_v51, %v437_v37 }
 0x177   : > { %v802_v41 = vadd.f32 %v3417_v52, %v437_v37  ;;  %v940_v50 = vadd.f32 %v3438_v7, %v437_v37 }
 0x178   : > { %v1259_v14 = vpop.f32.mrf.mxu2 }
 0x179   : > { %v3706_v6 = vadd.f32 %v1259_v14, %v864_v59  ;;  %v1308_v11 = vpop.f32.mrf.mxu3  ;;  %v1163_v4 = vpop.f32.mrf.mxu0 }
 0x17a   : > { %v3709_v12 = vadd.f32 %v1308_v11, %v933_v17  ;;  %v3711_v18 = vadd.f32 %v1163_v4, %v728_v23  ;;  %v1212_v26 = vpop.f32.mrf.mxu1 }
 0x17b   : > { %4589 = vst [vmem:[#allocation60_spill] sm:$0xff] %v3706_v6  ;;  %v3713_v28 = vadd.f32 %v1212_v26, %v797_v24  ;;  %v869_v24 = vadd.f32 %v3411_v49, %v432_v53  ;;  %v871_v49 = vadd.f32 %v3433_v3, %v437_v37 }
 0x17d   : > { %v447_v3 = vpop.permute.xlu1 %446 }
 0x180   : > { %v1261_v15 = vpop.f32.mrf.mxu2 }
 0x181   : > { %v3718_v14 = vadd.f32 %v1261_v15, %v866_v31  ;;  %v1310_v59 = vpop.f32.mrf.mxu3  ;;  %v1166_v6 = vpop.f32.mrf.mxu0 }
 0x182   : > { %v3721_v11 = vadd.f32 %v1310_v59, %v935_v33  ;;  %v3723_v4 = vadd.f32 %v1166_v6, %v731_v34  ;;  %v1215_v17 = vpop.f32.mrf.mxu1 }
 0x183   : > { %v3725_v23 = vadd.f32 %v1215_v17, %v800_v35  ;;  %v442_v35 = vpop.permute.xlu0 %441 }
 0x184   : > { %v736_v51 = vadd.f32 %v3440_v8, %v442_v35  ;;  %v805_v52 = vadd.f32 %v3445_v13, %v442_v35  ;;  %v943_v7 = vadd.f32 %v3458_v21, %v442_v35  ;;  %v738_v8 = vadd.f32 %v3460_v22, %v447_v3 }
 0x185   : > { %v807_v13 = vadd.f32 %v3462_v25, %v447_v3  ;;  %v945_v21 = vadd.f32 %v3472_v29, %v447_v3 }
 0x188   : > { %v1264_v16 = vpop.f32.mrf.mxu2 }
 0x189   : > { %v3730_v26 = vadd.f32 %v1264_v16, %v869_v24  ;;  %v1313_v31 = vpop.f32.mrf.mxu3  ;;  %v1168_v15 = vpop.f32.mrf.mxu0 }
 0x18a   : > { %v3733_v33 = vadd.f32 %v1313_v31, %v938_v39  ;;  %v3735_v6 = vadd.f32 %v1168_v15, %v733_v40  ;;  %v1217_v34 = vpop.f32.mrf.mxu1 }
 0x18b   : > { %v3737_v59 = vadd.f32 %v1217_v34, %v802_v41  ;;  %v874_v41 = vadd.f32 %v3456_v20, %v442_v35  ;;  %v876_v20 = vadd.f32 %v3467_v27, %v447_v3  ;;  %v457_v27 = vpop.permute.xlu0 %456 }
 0x190   : > { %v1266_v53 = vpop.f32.mrf.mxu2 }
 0x191   : > { %v3742_v17 = vadd.f32 %v1266_v53, %v871_v49  ;;  %v1315_v24 = vpop.f32.mrf.mxu3  ;;  %v1171_v16 = vpop.f32.mrf.mxu0 }
 0x192   : > { %v3745_v39 = vadd.f32 %v1315_v24, %v940_v50  ;;  %v3747_v40 = vadd.f32 %v1171_v16, %v736_v51  ;;  %v1220_v31 = vpop.f32.mrf.mxu1 }
 0x193   : > { %v3749_v15 = vadd.f32 %v1220_v31, %v805_v52  ;;  %v452_v52 = vpop.permute.xlu2 %451 }
 0x194   : > { %4590 = vst [vmem:[#allocation61_spill] sm:$0xff] %v3745_v39  ;;  %v741_v22 = vadd.f32 %v3474_v30, %v452_v52  ;;  %v810_v25 = vadd.f32 %v3476_v32, %v452_v52  ;;  %v948_v29 = vadd.f32 %v3484_v38, %v452_v52  ;;  %v743_v30 = vadd.f32 %v3486_v42, %v457_v27 }
 0x195   : > { %4591 = vst [vmem:[#allocation62_spill] sm:$0xff] %v3747_v40  ;;  %v812_v32 = vadd.f32 %v3488_v43, %v457_v27  ;;  %v950_v38 = vadd.f32 %v3495_v46, %v457_v27  ;;  %v746_v42 = vadd.f32 %v3497_v47, %v3687_v19  ;;  %v953_v47 = vadd.f32 %v3510_v55, %v3687_v19 }
 0x196   : > { %4592 = vst [vmem:[#allocation63_spill] sm:$0xff] %v3749_v15  ;;  %v955_v55 = vadd.f32 %v3521_v60, %v3701_v9  ;;  %v3817_v60 = vadd.f32 %v3533_v0, %v3656_v5 }
 0x198   : > { %v1269_v37 = vpop.f32.mrf.mxu2 }
 0x199   : > { %v3754_v34 = vadd.f32 %v1269_v37, %v874_v41  ;;  %v1318_v49 = vpop.f32.mrf.mxu3  ;;  %v1173_v53 = vpop.f32.mrf.mxu0 }
 0x19a   : > { %v3757_v50 = vadd.f32 %v1318_v49, %v943_v7  ;;  %v3759_v51 = vadd.f32 %v1173_v53, %v738_v8  ;;  %v1222_v24 = vpop.f32.mrf.mxu1 }
 0x19b   : > { %4593 = vst [vmem:[#allocation64_spill] sm:$0xff] %v3754_v34  ;;  %v3761_v16 = vadd.f32 %v1222_v24, %v807_v13  ;;  %v879_v13 = vadd.f32 %v3482_v36, %v452_v52  ;;  %v881_v36 = vadd.f32 %v3490_v44, %v457_v27  ;;  %v884_v44 = vadd.f32 %v3508_v54, %v3687_v19 }
 0x19c   : > { %4594 = vst [vmem:[#allocation65_spill] sm:$0xff] %v3757_v50  ;;  %v748_v27 = vadd.f32 %v3512_v56, %v3701_v9 }
 0x19d   : > { %4595 = vst [vmem:[#allocation66_spill] sm:$0xff] %v3759_v51 }
 0x19e   : > { %4596 = vst [vmem:[#allocation67_spill] sm:$0xff] %v3761_v16 }
 0x1a0   : > { %v1271_v35 = vpop.f32.mrf.mxu2 }
 0x1a1   : > { %v3766_v31 = vadd.f32 %v1271_v35, %v876_v20  ;;  %v1320_v41 = vpop.f32.mrf.mxu3  ;;  %v1176_v37 = vpop.f32.mrf.mxu0 }
 0x1a2   : > { %v3769_v7 = vadd.f32 %v1320_v41, %v945_v21  ;;  %v3771_v8 = vadd.f32 %v1176_v37, %v741_v22  ;;  %v1225_v49 = vpop.f32.mrf.mxu1 }
 0x1a3   : > { %4597 = vst [vmem:[#allocation68_spill] sm:$0xff] %v3766_v31  ;;  %v3773_v53 = vadd.f32 %v1225_v49, %v810_v25  ;;  %v815_v25 = vadd.f32 %v3499_v48, %v3687_v19 }
 0x1a4   : > { %4598 = vst [vmem:[#allocation69_spill] sm:$0xff] %v3769_v7  ;;  %v3911_v7 = vld [vmem:[%s3197_s11 + $0x8] sm:$0xff] }
 0x1a5   : > { %4599 = vst [vmem:[#allocation70_spill] sm:$0xff] %v3771_v8 }
 0x1a6   : > { %4600 = vst [vmem:[#allocation71_spill] sm:$0xff] %v3773_v53 }
 0x1a8   : > { %v1274_v3 = vpop.f32.mrf.mxu2 }
 0x1a9   : > { %v3778_v24 = vadd.f32 %v1274_v3, %v879_v13  ;;  %v1323_v20 = vpop.f32.mrf.mxu3  ;;  %v1178_v35 = vpop.f32.mrf.mxu0 }
 0x1aa   : > { %v3781_v21 = vadd.f32 %v1323_v20, %v948_v29  ;;  %v3783_v22 = vadd.f32 %v1178_v35, %v743_v30  ;;  %v1227_v41 = vpop.f32.mrf.mxu1 }
 0x1ab   : > { %4601 = vst [vmem:[#allocation72_spill] sm:$0xff] %v3778_v24  ;;  %v3785_v37 = vadd.f32 %v1227_v41, %v812_v32  ;;  %v817_v32 = vadd.f32 %v3514_v57, %v3701_v9 }
 0x1ac   : > { %4602 = vst [vmem:[#allocation73_spill] sm:$0xff] %v3781_v21 }
 0x1ad   : > { %4603 = vst [vmem:[#allocation74_spill] sm:$0xff] %v3783_v22 }
 0x1ae   : > { %4604 = vst [vmem:[#allocation75_spill] sm:$0xff] %v3785_v37  ;;  %v4625_v37 = vld [vmem:[#allocation19_spill] sm:$0xff] }
 0x1b0   : > { %v1276_v52 = vpop.f32.mrf.mxu2 }
 0x1b1   : > { %v3793_v49 = vadd.f32 %v1276_v52, %v881_v36  ;;  %v1325_v43 = vpop.f32.mrf.mxu3  ;;  %v1181_v13 = vpop.f32.mrf.mxu0 }
 0x1b2   : > { %v3795_v29 = vadd.f32 %v1325_v43, %v950_v38  ;;  %v1380_v3 = vadd.f32 %v1181_v13, %v746_v42  ;;  %v1230_v30 = vpop.f32.mrf.mxu1  ;;  %v886_v42 = vadd.f32 %v3516_v58, %v3701_v9  ;;  %v751_v13 = vadd.f32 %v3523_v61, %v3656_v5 }
 0x1b3   : > { %4605 = vst [vmem:[#allocation76_spill] sm:$0xff] %v3793_v49  ;;  %v1381_v20 = vadd.f32 %v1230_v30, %v815_v25  ;;  %v889_v58 = vadd.f32 %v3531_v63, %v3656_v5  ;;  %v3821_v9 = vadd.f32 %v3535_v1, %v3674_v45  ;;  %v3825_v61 = vadd.f32 %v3537_v2, %v3674_v45  ;;  %v4608_v63 = vld [vmem:[#allocation6_spill] sm:$0xff]  ;;  %v4611_v1 = vld [vmem:[#allocation8_spill] sm:$0xff]  ;;  %v4612_v2 = vld [vmem:[#allocation9_spill] sm:$0xff] }
 0x1b4   : > { %4606 = vst [vmem:[#allocation77_spill] sm:$0xff] %v3795_v29  ;;  %v1572_v46 = vsub.f32 0.0, %v1380_v3 }
 0x1b5   : > { %v1573_v48 = vsub.f32 0.0, %v1381_v20  ;;  %v820_v20 = vadd.f32 %v3525_v62, %v3656_v5 }
 0x1b6   : > { %v1604_v19 = vmul.f32 1.442695, %v1572_v46  ;;  %v4607_v46 = vld [vmem:[#allocation5_spill] sm:$0xff] }
 0x1b7   : > { %v1606_v3 = vmul.f32 1.442695, %v1573_v48  ;;  %v3829_v62 = vadd.f32 %v4607_v46, %v3674_v45  ;;  %v4609_v48 = vld [vmem:[#allocation46_spill] sm:$0xff] }
 0x1b8   : > { %v1279_v35 = vpop.f32.mrf.mxu2  ;;  %2760 = vpow2.f32 %v1604_v19 }
 0x1b9   : > { %v1382_v41 = vadd.f32 %v1279_v35, %v884_v44  ;;  %v1328_v36 = vpop.f32.mrf.mxu3  ;;  %v1183_v38 = vpop.f32.mrf.mxu0  ;;  %v4610_v35 = vld [vmem:[#allocation7_spill] sm:$0xff]  ;;  %2762 = vpow2.f32 %v1606_v3 }
 0x1ba   : > { %v1383_v52 = vadd.f32 %v1328_v36, %v953_v47  ;;  %v1384_v54 = vadd.f32 %v1183_v38, %v748_v27  ;;  %v1232_v25 = vpop.f32.mrf.mxu1  ;;  %v3833_v27 = vadd.f32 %v4608_v63, %v3674_v45  ;;  %v3837_v0 = vadd.f32 %v4610_v35, %v4609_v48  ;;  %v4613_v45 = vld [vmem:[#allocation10_spill] sm:$0xff]  ;;  %v4616_v63 = vld [vmem:[#allocation12_spill] sm:$0xff] }
 0x1bb   : > { %v1574_v43 = vsub.f32 0.0, %v1382_v41  ;;  %v1385_v56 = vadd.f32 %v1232_v25, %v817_v32  ;;  %v3841_v32 = vadd.f32 %v4611_v1, %v4609_v48  ;;  %v3845_v41 = vadd.f32 %v4612_v2, %v4609_v48  ;;  %v4617_v2 = vld [vmem:[#allocation13_spill] sm:$0xff] }
 0x1bc   : > { %v1575_v57 = vsub.f32 0.0, %v1383_v52  ;;  %v1576_v30 = vsub.f32 0.0, %v1384_v54  ;;  %v3849_v52 = vadd.f32 %v4613_v45, %v4609_v48  ;;  %v4620_v45 = vld [vmem:[#allocation15_spill] sm:$0xff] }
 0x1bd   : > { %v1608_v44 = vmul.f32 1.442695, %v1574_v43  ;;  %v1577_v47 = vsub.f32 0.0, %v1385_v56  ;;  %v4614_v56 = vld [vmem:[#allocation56_spill] sm:$0xff] }
 0x1be   : > { %v1610_v5 = vmul.f32 1.442695, %v1575_v57  ;;  %v1612_v36 = vmul.f32 1.442695, %v1576_v30  ;;  %v4615_v57 = vld [vmem:[#allocation11_spill] sm:$0xff]  ;;  %v3857_v35 = vadd.f32 %v4616_v63, %v4614_v56  ;;  %v3861_v48 = vadd.f32 %v4617_v2, %v4614_v56  ;;  %v4621_v63 = vld [vmem:[#allocation16_spill] sm:$0xff] }
 0x1bf   : > { %2764 = vpow2.f32 %v1608_v44  ;;  %v1614_v54 = vmul.f32 1.442695, %v1577_v47  ;;  %v3853_v46 = vadd.f32 %v4615_v57, %v4614_v56  ;;  %v4618_v44 = vld [vmem:[#allocation14_spill] sm:$0xff] }
 0x1c0   : > { %v1281_v38 = vpop.f32.mrf.mxu2  ;;  %2766 = vpow2.f32 %v1610_v5 }
 0x1c1   : > { %v1386_v25 = vadd.f32 %v1281_v38, %v886_v42  ;;  %v1330_v19 = vpop.f32.mrf.mxu3  ;;  %v1186_v43 = vpop.f32.mrf.mxu0  ;;  %v3865_v42 = vadd.f32 %v4618_v44, %v4614_v56  ;;  %v4619_v38 = vld [vmem:[#allocation41_spill] sm:$0xff]  ;;  %2768 = vpow2.f32 %v1612_v36 }
 0x1c2   : > { %v1387_v3 = vadd.f32 %v1330_v19, %v955_v55  ;;  %v1388_v30 = vadd.f32 %v1186_v43, %v751_v13  ;;  %v1235_v1 = vpop.f32.mrf.mxu1  ;;  %v3869_v57 = vadd.f32 %v4620_v45, %v4619_v38  ;;  %v3873_v29 = vadd.f32 %v4621_v63, %v4619_v38  ;;  %v2761_v13 = vpop.eup %2760  ;;  %v4622_v56 = vld [vmem:[#allocation17_spill] sm:$0xff]  ;;  %v4624_v45 = vld [vmem:[#allocation47_spill] sm:$0xff] }
 0x1c3   : > { %v1578_v47 = vsub.f32 0.0, %v1386_v25  ;;  %2770 = vpow2.f32 %v1614_v54  ;;  %v1389_v2 = vadd.f32 %v1235_v1, %v820_v20  ;;  %v2763_v49 = vpop.eup %2762  ;;  %v3877_v5 = vadd.f32 %v4622_v56, %v4619_v38  ;;  %v4623_v25 = vld [vmem:[#allocation18_spill] sm:$0xff]  ;;  %v4626_v54 = vld [vmem:[#allocation20_spill] sm:$0xff]  ;;  %v4627_v1 = vld [vmem:[#allocation21_spill] sm:$0xff] }
 0x1c4   : > { %v1579_v55 = vsub.f32 0.0, %v1387_v3  ;;  %v1580_v43 = vsub.f32 0.0, %v1388_v30  ;;  %v3881_v44 = vadd.f32 %v4623_v25, %v4619_v38  ;;  %v3885_v63 = vadd.f32 %v4625_v37, %v4624_v45  ;;  %v4628_v38 = vld [vmem:[#allocation22_spill] sm:$0xff] }
 0x1c5   : > { %v1616_v19 = vmul.f32 1.442695, %v1578_v47  ;;  %v1668_v36 = vadd.f32 1.0, %v2761_v13  ;;  %v2765_v3 = vpop.eup %2764  ;;  %v3889_v47 = vadd.f32 %v4626_v54, %v4624_v45  ;;  %v1669_v20 = vadd.f32 1.0, %v2763_v49 }
 0x1c6   : > { %v1618_v30 = vmul.f32 1.442695, %v1579_v55  ;;  %v3893_v56 = vadd.f32 %v4627_v1, %v4624_v45  ;;  %v3897_v25 = vadd.f32 %v4628_v38, %v4624_v45  ;;  %v1670_v37 = vadd.f32 1.0, %v2765_v3  ;;  %v2767_v22 = vpop.eup %2766  ;;  %v3900_v55 = vld [vmem:[%s3197_s11] sm:$0xff] }
 0x1c7   : > { %2772 = vpow2.f32 %v1616_v19  ;;  %v1620_v21 = vmul.f32 1.442695, %v1580_v43  ;;  %v1581_v54 = vsub.f32 0.0, %v1389_v2  ;;  %v2769_v19 = vpop.eup %2768  ;;  %v1671_v1 = vadd.f32 1.0, %v2767_v22 }
 0x1c8   : > { %2774 = vrcp.f32 %v1668_v36  ;;  %v1284_v13 = vpop.f32.mrf.mxu2 }
 0x1c9   : > { %2776 = vrcp.f32 %v1669_v20  ;;  %v1390_v24 = vadd.f32 %v1284_v13, %v889_v58  ;;  %v1333_v53 = vpop.f32.mrf.mxu3  ;;  %v1188_v49 = vpop.f32.mrf.mxu0  ;;  %v1672_v20 = vadd.f32 1.0, %v2769_v19  ;;  %v357_v13 = vld [vmem:[%s3197_s11 + $0x10] sm:$0xff]  ;;  %v1733_v19 = vunpack.c.h.bf16 %v3900_v55 }
 0x1ca   : > { %2778 = vrcp.f32 %v1670_v37  ;;  %v1391_v8 = vadd.f32 %v1333_v53, %v3817_v60  ;;  %v1392_v45 = vadd.f32 %v1188_v49, %v3821_v9  ;;  %v1237_v36 = vpop.f32.mrf.mxu1  ;;  %v2771_v3 = vpop.eup %2770  ;;  %v1732_v37 = vunpack.c.l.bf16 %v3900_v55  ;;  %v3908_v49 = vld [vmem:[%s3197_s11 + $0x20] sm:$0xff] }
 0x1cb   : > { %2780 = vpow2.f32 %v1618_v30  ;;  %v1582_v43 = vsub.f32 0.0, %v1390_v24  ;;  %v1393_v58 = vadd.f32 %v1237_v36, %v3825_v61  ;;  %v1673_v2 = vadd.f32 1.0, %v2771_v3 }
 0x1cc   : > { %2782 = vrcp.f32 %v1671_v1  ;;  %v1583_v38 = vsub.f32 0.0, %v1391_v8  ;;  %v1622_v53 = vmul.f32 1.442695, %v1581_v54  ;;  %v1584_v60 = vsub.f32 0.0, %v1392_v45  ;;  %v3917_v45 = vld [vmem:[%s3197_s11 + $0x30] sm:$0xff] }
 0x1cd   : > { %v2773_v22 = vpop.eup %2772  ;;  %2784 = vrcp.f32 %v1672_v20  ;;  %v1585_v9 = vsub.f32 0.0, %v1393_v58  ;;  %v1624_v61 = vmul.f32 1.442695, %v1582_v43  ;;  %v1736_v36 = vunpack.c.l.bf16 %v357_v13 }
 0x1ce   : > { %v2775_v30 = vpop.eup %2774  ;;  %2786 = vrcp.f32 %v1673_v2  ;;  %v1674_v24 = vadd.f32 1.0, %v2773_v22  ;;  %v1626_v1 = vmul.f32 1.442695, %v1583_v38  ;;  %v1737_v3 = vunpack.c.h.bf16 %v357_v13 }
 0x1cf   : > { %v2777_v8 = vpop.eup %2776  ;;  %2788 = vpow2.f32 %v1620_v21  ;;  %v1628_v55 = vmul.f32 1.442695, %v1584_v60  ;;  %v1630_v22 = vmul.f32 1.442695, %v1585_v9 }
 0x1d0   : > { %v3914_v20 = vpop.eup %2778  ;;  %2790 = vrcp.f32 %v1674_v24  ;;  %v1286_v54 = vpop.f32.mrf.mxu2 }
 0x1d1   : > { %v2781_v43 = vpop.eup %2780  ;;  %2792 = vpow2.f32 %v1622_v53  ;;  %v1394_v21 = vadd.f32 %v1286_v54, %v3829_v62  ;;  %v1335_v38 = vpop.f32.mrf.mxu3  ;;  %v3929_v54 = vmul.f32 %v2775_v30, %v1732_v37 }
 0x1d2   : > { %v1191_v13 = vpop.f32.mrf.mxu0  ;;  %v3923_v16 = vpop.eup %2782  ;;  %v1675_v24 = vadd.f32 1.0, %v2781_v43  ;;  %2794 = vpow2.f32 %v1624_v61  ;;  %v1395_v51 = vadd.f32 %v1335_v38, %v3833_v27  ;;  %v3934_v61 = vld [vmem:[%s3197_s11 + $0x18] sm:$0xff] }
 0x1d3   : > { %v1396_v58 = vadd.f32 %v1191_v13, %v3837_v0  ;;  %v1240_v31 = vpop.f32.mrf.mxu1  ;;  %v2785_v50 = vpop.eup %2784  ;;  %2796 = vpow2.f32 %v1626_v1  ;;  %v1586_v2 = vsub.f32 0.0, %v1394_v21  ;;  %v3940_v21 = vmul.f32 %v2777_v8, %v1733_v19 }
 0x1d4   : > { %v1397_v53 = vadd.f32 %v1240_v31, %v3841_v32  ;;  %v2787_v62 = vpop.eup %2786  ;;  %2798 = vrcp.f32 %v1675_v24  ;;  %v1587_v9 = vsub.f32 0.0, %v1395_v51  ;;  %v3931_v34 = vmul.f32 %v2785_v50, %v1736_v36 }
 0x1d5   : > { %v2789_v27 = vpop.eup %2788  ;;  %2800 = vpow2.f32 %v1628_v55  ;;  %v1632_v0 = vmul.f32 1.442695, %v1586_v2  ;;  %v1588_v43 = vsub.f32 0.0, %v1396_v58  ;;  %v3936_v38 = vmul.f32 %v2787_v62, %v1737_v3  ;;  %v3950_v62 = vld [vmem:[%s3197_s11 + $0x40] sm:$0xff] }
 0x1d6   : > { %v3938_v1 = vpop.eup %2790  ;;  %v1676_v31 = vadd.f32 1.0, %v2789_v27  ;;  %2802 = vpow2.f32 %v1630_v22  ;;  %v1634_v32 = vmul.f32 1.442695, %v1587_v9  ;;  %v1589_v37 = vsub.f32 0.0, %v1397_v53 }
 0x1d7   : > { %v2793_v51 = vpop.eup %2792  ;;  %2804 = vpow2.f32 %v1632_v0  ;;  %v1636_v22 = vmul.f32 1.442695, %v1588_v43 }
 0x1d8   : > { %v2795_v36 = vpop.eup %2794  ;;  %2806 = vrcp.f32 %v1676_v31  ;;  %v1677_v58 = vadd.f32 1.0, %v2793_v51  ;;  %v1289_v3 = vpop.f32.mrf.mxu2 }
 0x1d9   : > { %v2797_v19 = vpop.eup %2796  ;;  %v1678_v8 = vadd.f32 1.0, %v2795_v36  ;;  %2808 = vpow2.f32 %v1634_v32  ;;  %v1398_v13 = vadd.f32 %v1289_v3, %v3845_v41  ;;  %v1338_v24 = vpop.f32.mrf.mxu3  ;;  %v3959_v36 = vld [vmem:[%s3197_s11 + $0x28] sm:$0xff] }
 0x1da   : > { %v1193_v53 = vpop.f32.mrf.mxu0  ;;  %v3952_v9 = vpop.eup %2798  ;;  %2810 = vrcp.f32 %v1677_v58  ;;  %v1679_v27 = vadd.f32 1.0, %v2797_v19  ;;  %v1399_v0 = vadd.f32 %v1338_v24, %v3849_v52  ;;  %v1638_v24 = vmul.f32 1.442695, %v1589_v37  ;;  %v3968_v19 = vld [vmem:[%s3197_s11 + $0x50] sm:$0xff] }
 0x1db   : > { %v1400_v31 = vadd.f32 %v1193_v53, %v3853_v46  ;;  %v1242_v51 = vpop.f32.mrf.mxu1  ;;  %v2801_v55 = vpop.eup %2800  ;;  %2812 = vrcp.f32 %v1678_v8  ;;  %v1590_v32 = vsub.f32 0.0, %v1398_v13 }
 0x1dc   : > { %v1401_v43 = vadd.f32 %v1242_v51, %v3857_v35  ;;  %v2803_v3 = vpop.eup %2802  ;;  %2814 = vrcp.f32 %v1679_v27  ;;  %v1680_v2 = vadd.f32 1.0, %v2801_v55  ;;  %v1591_v58 = vsub.f32 0.0, %v1399_v0  ;;  %v3964_v51 = vld [vmem:[%s3197_s11 + $0x38] sm:$0xff] }
 0x1dd   : > { %v2805_v52 = vpop.eup %2804  ;;  %v1681_v46 = vadd.f32 1.0, %v2803_v3  ;;  %2816 = vpow2.f32 %v1636_v22  ;;  %v1592_v8 = vsub.f32 0.0, %v1400_v31  ;;  %v1640_v55 = vmul.f32 1.442695, %v1590_v32 }
 0x1de   : > { %v2807_v13 = vpop.eup %2806  ;;  %2818 = vrcp.f32 %v1680_v2  ;;  %v1682_v35 = vadd.f32 1.0, %v2805_v52  ;;  %v1593_v0 = vsub.f32 0.0, %v1401_v43  ;;  %v1642_v31 = vmul.f32 1.442695, %v1591_v58 }
 0x1df   : > { %v2809_v27 = vpop.eup %2808  ;;  %2820 = vrcp.f32 %v1681_v46  ;;  %v4629_v52 = vunpack.c.l.bf16 %v3911_v7  ;;  %v1644_v60 = vmul.f32 1.442695, %v1592_v8 }
 0x1e0   : > { %v2811_v22 = vpop.eup %2810  ;;  %2822 = vrcp.f32 %v1682_v35  ;;  %v1683_v37 = vadd.f32 1.0, %v2809_v27  ;;  %v1291_v2 = vpop.f32.mrf.mxu2 }
 0x1e1   : > { %v3974_v53 = vmul.f32 %v3914_v20, %v4629_v52  ;;  %v2813_v41 = vpop.eup %2812  ;;  %2824 = vpow2.f32 %v1638_v24  ;;  %v1402_v32 = vadd.f32 %v1291_v2, %v3861_v48  ;;  %v1340_v43 = vpop.f32.mrf.mxu3  ;;  %v1646_v24 = vmul.f32 1.442695, %v1593_v0  ;;  %v3985_v2 = vld [vmem:[%s3197_s11 + $0x48] sm:$0xff]  ;;  %v4008_v0 = vld [vmem:[%s3197_s11 + $0x58] sm:$0xff] }
 0x1e2   : > { %v1196_v46 = vpop.f32.mrf.mxu0  ;;  %v3978_v30 = vpop.eup %2814  ;;  %2826 = vrcp.f32 %v1683_v37  ;;  %v1403_v58 = vadd.f32 %v1340_v43, %v3865_v42 }
 0x1e3   : > { %v1404_v35 = vadd.f32 %v1196_v46, %v3869_v57  ;;  %v1245_v27 = vpop.f32.mrf.mxu1  ;;  %v2817_v52 = vpop.eup %2816  ;;  %2828 = vpow2.f32 %v1640_v55  ;;  %v1594_v8 = vsub.f32 0.0, %v1402_v32 }
 0x1e4   : > { %v1405_v48 = vadd.f32 %v1245_v27, %v3873_v29  ;;  %v2819_v50 = vpop.eup %2818  ;;  %v1684_v3 = vadd.f32 1.0, %v2817_v52  ;;  %2830 = vpow2.f32 %v1642_v31  ;;  %v1595_v15 = vsub.f32 0.0, %v1403_v58 }
 0x1e5   : > { %v1596_v37 = vsub.f32 0.0, %v1404_v35  ;;  %v2821_v40 = vpop.eup %2820  ;;  %2832 = vpow2.f32 %v1644_v60  ;;  %v1648_v42 = vmul.f32 1.442695, %v1594_v8  ;;  %v4630_v31 = vunpack.c.l.bf16 %v3908_v49 }
 0x1e6   : > { %v1597_v57 = vsub.f32 0.0, %v1405_v48  ;;  %v2823_v46 = vpop.eup %2822  ;;  %2834 = vrcp.f32 %v1684_v3  ;;  %v1650_v55 = vmul.f32 1.442695, %v1595_v15  ;;  %v4631_v15 = vunpack.c.h.bf16 %v3908_v49 }
 0x1e7   : > { %v2825_v32 = vpop.eup %2824  ;;  %2836 = vpow2.f32 %v1646_v24  ;;  %v1652_v27 = vmul.f32 1.442695, %v1596_v37  ;;  %v3992_v58 = vmul.f32 %v2807_v13, %v4630_v31  ;;  %v4632_v48 = vunpack.c.l.bf16 %v3934_v61 }
 0x1e8   : > { %v3995_v35 = vpop.eup %2826  ;;  %v1685_v52 = vadd.f32 1.0, %v2825_v32  ;;  %2838 = vpow2.f32 %v1648_v42  ;;  %v1294_v3 = vpop.f32.mrf.mxu2  ;;  %v3999_v8 = vmul.f32 %v2811_v22, %v4631_v15  ;;  %v1654_v13 = vmul.f32 1.442695, %v1597_v57 }
 0x1e9   : > { %v4004_v24 = vmul.f32 %v3938_v1, %v4632_v48  ;;  %v2829_v37 = vpop.eup %2828  ;;  %2840 = vpow2.f32 %v1650_v55  ;;  %v1406_v31 = vadd.f32 %v1294_v3, %v3877_v5  ;;  %v1343_v60 = vpop.f32.mrf.mxu3  ;;  %v4633_v42 = vunpack.c.l.bf16 %v3959_v36 }
 0x1ea   : > { %v1198_v43 = vpop.f32.mrf.mxu0  ;;  %v2831_v49 = vpop.eup %2830  ;;  %2842 = vrcp.f32 %v1685_v52  ;;  %v1686_v22 = vadd.f32 1.0, %v2829_v37  ;;  %v1407_v15 = vadd.f32 %v1343_v60, %v3881_v44  ;;  %v1754_v52 = vunpack.c.l.bf16 %v4008_v0 }
 0x1eb   : > { %v4012_v32 = vmul.f32 %v2813_v41, %v4633_v42  ;;  %v1408_v1 = vadd.f32 %v1198_v43, %v3885_v63  ;;  %v1247_v48 = vpop.f32.mrf.mxu1  ;;  %v2833_v55 = vpop.eup %2832  ;;  %v1687_v57 = vadd.f32 1.0, %v2831_v49  ;;  %2844 = vpow2.f32 %v1652_v27 }
 0x1ec   : > { %v1598_v5 = vsub.f32 0.0, %v1406_v31  ;;  %v1409_v3 = vadd.f32 %v1247_v48, %v3889_v47  ;;  %v2835_v20 = vpop.eup %2834  ;;  %2846 = vrcp.f32 %v1686_v22  ;;  %v1688_v29 = vadd.f32 1.0, %v2833_v55 }
 0x1ed   : > { %v4634_v41 = vunpack.c.l.bf16 %v3917_v45  ;;  %v2837_v37 = vpop.eup %2836  ;;  %2848 = vrcp.f32 %v1687_v57  ;;  %v1599_v44 = vsub.f32 0.0, %v1407_v15  ;;  %v4635_v63 = vunpack.c.h.bf16 %v3917_v45 }
 0x1ee   : > { %v1755_v27 = vunpack.c.h.bf16 %v4008_v0  ;;  %v2839_v60 = vpop.eup %2838  ;;  %2850 = vrcp.f32 %v1688_v29  ;;  %v1689_v47 = vadd.f32 1.0, %v2837_v37  ;;  %v1600_v31 = vsub.f32 0.0, %v1408_v1 }
 0x1ef   : > { %v4019_v42 = vmul.f32 %v2819_v50, %v4634_v41  ;;  %v4024_v43 = vmul.f32 %v2821_v40, %v4635_v63  ;;  %v4636_v49 = vunpack.c.l.bf16 %v3964_v51  ;;  %v2841_v50 = vpop.eup %2840  ;;  %v1690_v48 = vadd.f32 1.0, %v2839_v60 }
 0x1f0   : > { %2852 = vpow2.f32 %v1654_v13  ;;  %v1656_v55 = vmul.f32 1.442695, %v1598_v5  ;;  %v1601_v57 = vsub.f32 0.0, %v1409_v3  ;;  %v2843_v15 = vpop.eup %2842  ;;  %v1691_v45 = vadd.f32 1.0, %v2841_v50  ;;  %v1296_v40 = vpop.f32.mrf.mxu2 }
 0x1f1   : > { %v4029_v22 = vmul.f32 %v2823_v46, %v4636_v49  ;;  %2854 = vrcp.f32 %v1689_v47  ;;  %v4637_v41 = vunpack.c.l.bf16 %v3950_v62  ;;  %v2845_v1 = vpop.eup %2844  ;;  %v1658_v46 = vmul.f32 1.442695, %v1599_v44  ;;  %v1345_v63 = vpop.f32.mrf.mxu3 }
 0x1f2   : > { %2856 = vrcp.f32 %v1690_v48  ;;  %v1410_v37 = vadd.f32 %v1296_v40, %v3893_v56  ;;  %v2847_v5 = vpop.eup %2846  ;;  %v1660_v3 = vmul.f32 1.442695, %v1600_v31  ;;  %v1411_v60 = vadd.f32 %v1345_v63, %v3897_v25 }
 0x1f3   : > { %v4033_v0 = vmul.f32 %v2835_v20, %v4637_v41  ;;  %2858 = vrcp.f32 %v1691_v45  ;;  %v2849_v47 = vpop.eup %2848  ;;  %v1662_v49 = vmul.f32 1.442695, %v1601_v57  ;;  %v4638_v44 = vunpack.c.h.bf16 %v3950_v62 }
 0x1f4   : > { %2860 = vpow2.f32 %v1656_v55  ;;  %v1602_v50 = vsub.f32 0.0, %v1410_v37  ;;  %v2851_v56 = vpop.eup %2850  ;;  %v1692_v40 = vadd.f32 1.0, %v2845_v1  ;;  %v1603_v41 = vsub.f32 0.0, %v1411_v60 }
 0x1f5   : > { %v4045_v48 = vmul.f32 %v2843_v15, %v4638_v44  ;;  %v4639_v13 = vunpack.c.h.bf16 %v3959_v36  ;;  %v4640_v25 = vunpack.c.h.bf16 %v3964_v51  ;;  %2862 = vpow2.f32 %v1658_v46 }
 0x1f6   : > { %v2853_v55 = vpop.eup %2852  ;;  %v1664_v57 = vmul.f32 1.442695, %v1602_v50  ;;  %v4641_v62 = vunpack.c.l.bf16 %v3968_v19  ;;  %2864 = vpow2.f32 %v1660_v3  ;;  %v1666_v36 = vmul.f32 1.442695, %v1603_v41 }
 0x1f7   : > { %v4050_v31 = vmul.f32 %v3978_v30, %v4639_v13  ;;  %v4055_v45 = vmul.f32 %v3995_v35, %v4640_v25  ;;  %v2855_v37 = vpop.eup %2854  ;;  %v4642_v30 = vunpack.c.l.bf16 %v3985_v2  ;;  %2866 = vpow2.f32 %v1662_v49 }
 0x1f8   : > { %v4059_v15 = vmul.f32 %v2851_v56, %v4641_v62  ;;  %v2857_v35 = vpop.eup %2856  ;;  %v4643_v13 = vunpack.c.h.bf16 %v3968_v19  ;;  %v1739_v50 = vunpack.c.h.bf16 %v3934_v61  ;;  %v1693_v44 = vadd.f32 1.0, %v2853_v55 }
 0x1f9   : > { %v4065_v63 = vmul.f32 %v2847_v5, %v4642_v30  ;;  %v2859_v3 = vpop.eup %2858  ;;  %v4076_v56 = vmul.f32 %v2857_v35, %v1754_v52  ;;  %v4644_v5 = vunpack.c.h.bf16 %v3985_v2  ;;  %v4645_v25 = vunpack.c.h.bf16 %v3911_v7  ;;  %v367_v30 = vld [vmem:[%s3197_s11 + $0x60] sm:$0xff] }
 0x1fa   : > { %v4073_v60 = vmul.f32 %v2855_v37, %v4643_v13  ;;  %v2861_v62 = vpop.eup %2860  ;;  %2868 = vpow2.f32 %v1664_v57  ;;  %v4089_v37 = vmul.f32 %v2859_v3, %v1755_v27  ;;  %v4092_v61 = vmul.f32 %v3952_v9, %v1739_v50 }
 0x1fb   : > { %v4080_v41 = vmul.f32 %v2849_v47, %v4644_v5  ;;  %v4085_v49 = vmul.f32 %v3923_v16, %v4645_v25  ;;  %v1694_v52 = vadd.f32 1.0, %v2861_v62  ;;  %2870 = vpow2.f32 %v1666_v36  ;;  %v2863_v2 = vpop.eup %2862 }
 0x1fc   : > { %v1813_v19 = vpack.c.bf16 %v4073_v60, %v4045_v48  ;;  %v1814_v7 = vpack.c.bf16 %v4076_v56, %v4065_v63  ;;  %v2865_v48 = vpop.eup %2864  ;;  %2872 = vrcp.f32 %v1692_v40  ;;  %v1695_v9 = vadd.f32 1.0, %v2863_v2  ;;  %v369_v63 = vld [vmem:[%s3197_s11 + $0x70] sm:$0xff]  ;;  %v370_v56 = vld [vmem:[%s3197_s11 + $0x78] sm:$0xff] }
 0x1fd   : > { %v1815_v16 = vpack.c.bf16 %v4089_v37, %v4080_v41  ;;  %v2867_v27 = vpop.eup %2866  ;;  %2874 = vrcp.f32 %v1693_v44  ;;  %v1696_v55 = vadd.f32 1.0, %v2865_v48  ;;  %v1756_v40 = vunpack.c.l.bf16 %v367_v30  ;;  %v368_v44 = vld [vmem:[%s3197_s11 + $0x68] sm:$0xff] }
 0x1fe   : > { %2876 = vrcp.f32 %v1694_v52  ;;  %v1697_v57 = vadd.f32 1.0, %v2867_v27  ;;  %v1760_v3 = vunpack.c.l.bf16 %v369_v63  ;;  %v1757_v41 = vunpack.c.h.bf16 %v367_v30 }
 0x1ff   : > { %2878 = vrcp.f32 %v1696_v55  ;;  %v1761_v25 = vunpack.c.h.bf16 %v369_v63  ;;  %v1758_v52 = vunpack.c.l.bf16 %v368_v44  ;;  %v1762_v2 = vunpack.c.l.bf16 %v370_v56 }
 0x200   : > { %v2869_v36 = vpop.eup %2868  ;;  %2880 = vrcp.f32 %v1697_v57  ;;  %v1759_v57 = vunpack.c.h.bf16 %v368_v44 }
 0x201   : > { %v2871_v35 = vpop.eup %2870  ;;  %v1698_v13 = vadd.f32 1.0, %v2869_v36  ;;  %2882 = vrcp.f32 %v1695_v9  ;;  %v1763_v9 = vunpack.c.h.bf16 %v370_v56 }
 0x202   : > { %v1699_v60 = vadd.f32 1.0, %v2871_v35  ;;  %v2873_v50 = vpop.eup %2872 }
 0x203   : > { %2884 = vrcp.f32 %v1698_v13  ;;  %v2875_v5 = vpop.eup %2874  ;;  %v1796_v27 = vmul.f32 %v2873_v50, %v1756_v40  ;;  %v4646_v50 = vpack.c.bf16 %v4059_v15, %v4033_v0  ;;  %v4647_v40 = vpack.c.bf16 %v4019_v42, %v3992_v58  ;;  %v2695_v0 = vld [vmem:[%s4525_s4] sm:$0xff] }
 0x204   : > { %2886 = vrcp.f32 %v1699_v60  ;;  %v2877_v62 = vpop.eup %2876  ;;  %v1797_v35 = vmul.f32 %v2875_v5, %v1757_v41  ;;  %v4651_v58 = vpack.c.bf16 %v4055_v45, %v4050_v31  ;;  %v1415_v45 = vsub.f32 0.0, %v3709_v12 }
 0x205   : > { %v2879_v37 = vpop.eup %2878  ;;  %v1798_v29 = vmul.f32 %v2877_v62, %v1758_v52  ;;  %v1420_v12 = vsub.f32 0.0, %v3723_v4  ;;  %v1423_v62 = vsub.f32 0.0, %v3733_v33  ;;  %v1425_v33 = vsub.f32 0.0, %v3737_v59 }
 0x206   : > { %v2881_v48 = vpop.eup %2880  ;;  %v1800_v55 = vmul.f32 %v2879_v37, %v1760_v3 }
 0x207   : > { %v2883_v36 = vpop.eup %2882  ;;  %v1801_v13 = vmul.f32 %v2881_v48, %v1761_v25  ;;  %v1460_v41 = vmul.f32 1.442695, %v1420_v12 }
 0x208   : > { %v1816_v1 = vpack.c.bf16 %v1800_v55, %v1796_v27  ;;  %v1799_v30 = vmul.f32 %v2883_v36, %v1759_v57  ;;  %v1466_v27 = vmul.f32 1.442695, %v1423_v62 }
 0x209   : > { %v2885_v47 = vpop.eup %2884  ;;  %v1817_v20 = vpack.c.bf16 %v1801_v13, %v1797_v35  ;;  %v1426_v13 = vsub.f32 0.0, %v3742_v17 }
 0x20a   : > { %v2887_v51 = vpop.eup %2886  ;;  %v1802_v60 = vmul.f32 %v2885_v47, %v1762_v2  ;;  %1856 = vmatpush.bf16.msra.mxu0 %v1816_v1  ;;  %v4648_v1 = vpack.c.bf16 %v4024_v43, %v3999_v8  ;;  %v4652_v8 = vpack.c.bf16 %v3936_v38, %v3940_v21  ;;  %v2697_v38 = vld [vmem:[%s4525_s4 + $0x10] sm:$0xff]  ;;  %v2698_v21 = vld [vmem:[%s4525_s4 + $0x18] sm:$0xff] }
 0x20b   : > { %v1803_v63 = vmul.f32 %v2887_v51, %v1763_v9  ;;  %1885 = vmatpush.bf16.msra.mxu1 %v1817_v20  ;;  %v1416_v51 = vsub.f32 0.0, %v3711_v18  ;;  %v1421_v18 = vsub.f32 0.0, %v3725_v23  ;;  %v1424_v23 = vsub.f32 0.0, %v3735_v6 }
 0x20c   : > { %v1818_v46 = vpack.c.bf16 %v1802_v60, %v1798_v29  ;;  %v4649_v29 = vpack.c.bf16 %v4029_v22, %v4012_v32  ;;  %v4653_v32 = vpack.c.bf16 %v4004_v24, %v3974_v53  ;;  %v1412_v53 = vsub.f32 0.0, %v3697_v10  ;;  %v4655_v24 = vld [vmem:[#allocation59_spill] sm:$0xff]  ;;  %v4656_v22 = vld [vmem:[#allocation60_spill] sm:$0xff] }
 0x20d   : > { %v1819_v39 = vpack.c.bf16 %v1803_v63, %v1799_v30  ;;  %v1413_v42 = vsub.f32 0.0, %v4655_v24  ;;  %v1414_v20 = vsub.f32 0.0, %v4656_v22  ;;  %v1452_v10 = vmul.f32 1.442695, %v1416_v51 }
 0x20e   : > { %1914 = vmatpush.bf16.msra.mxu2 %v1818_v46  ;;  %1857 = vmatpush.bf16.msra.mxu0 %v4646_v50  ;;  %v1444_v43 = vmul.f32 1.442695, %v1412_v53  ;;  %v1450_v46 = vmul.f32 1.442695, %v1415_v45  ;;  %v1462_v25 = vmul.f32 1.442695, %v1421_v18 }
 0x20f   : > { %1943 = vmatpush.bf16.msra.mxu3 %v1819_v39  ;;  %1886 = vmatpush.bf16.msra.mxu1 %v1813_v19  ;;  %v4650_v39 = vpack.c.bf16 %v3931_v34, %v3929_v54  ;;  %v4654_v34 = vpack.c.bf16 %v4092_v61, %v4085_v49  ;;  %v2696_v54 = vld [vmem:[%s4525_s4 + $0x8] sm:$0xff]  ;;  %v1446_v31 = vmul.f32 1.442695, %v1413_v42  ;;  %v1448_v15 = vmul.f32 1.442695, %v1414_v20  ;;  %v4659_v53 = vld [vmem:[#allocation63_spill] sm:$0xff] }
 0x210   : > { %2888 = vpow2.f32 %v1444_v43  ;;  %v1417_v49 = vsub.f32 0.0, %v3713_v28  ;;  %v1418_v19 = vsub.f32 0.0, %v3718_v14  ;;  %v1419_v61 = vsub.f32 0.0, %v3721_v11  ;;  %v507_v43 = vpop.permute.xlu2 %506  ;;  %v4660_v45 = vld [vmem:[#allocation64_spill] sm:$0xff] }
 0x211   : > { %2890 = vpow2.f32 %v1446_v31  ;;  %v1422_v11 = vsub.f32 0.0, %v3730_v26  ;;  %v1468_v9 = vmul.f32 1.442695, %v1424_v23  ;;  %v1472_v59 = vmul.f32 1.442695, %v1426_v13 }
 0x212   : > { %1915 = vmatpush.bf16.msra.mxu2 %v1814_v7  ;;  %1858 = vmatpush.bf16.msra.mxu0 %v4647_v40  ;;  %2892 = vpow2.f32 %v1448_v15  ;;  %v1456_v3 = vmul.f32 1.442695, %v1418_v19  ;;  %v1458_v44 = vmul.f32 1.442695, %v1419_v61  ;;  %v1470_v40 = vmul.f32 1.442695, %v1425_v33 }
 0x213   : > { %1944 = vmatpush.bf16.msra.mxu3 %v1815_v16  ;;  %1887 = vmatpush.bf16.msra.mxu1 %v4648_v1  ;;  %2894 = vpow2.f32 %v1450_v46  ;;  %v1454_v16 = vmul.f32 1.442695, %v1417_v49  ;;  %v1464_v2 = vmul.f32 1.442695, %v1422_v11  ;;  %v4657_v1 = vld [vmem:[#allocation61_spill] sm:$0xff]  ;;  %v1429_v24 = vsub.f32 0.0, %v4659_v53 }
 0x214   : > { %2896 = vpow2.f32 %v1452_v10  ;;  %v1430_v15 = vsub.f32 0.0, %v4660_v45  ;;  %v4661_v46 = vld [vmem:[#allocation25_spill] sm:$0xff]  ;;  %v4679_v45 = vld [vmem:[#allocation35_spill] sm:$0xff] }
 0x215   : > { %2898 = vpow2.f32 %v1454_v16  ;;  %v4662_v10 = vld [vmem:[#allocation65_spill] sm:$0xff]  ;;  %v4663_v16 = vld [vmem:[#allocation26_spill] sm:$0xff]  ;;  %v1478_v12 = vmul.f32 1.442695, %v1429_v24  ;;  %v4677_v24 = vld [vmem:[#allocation68_spill] sm:$0xff] }
 0x216   : > { %1916 = vmatpush.bf16.msra.mxu2 %v4649_v29  ;;  %1859 = vmatpush.bf16.msra.mxu0 %v4650_v39  ;;  %v2889_v7 = vpop.eup %2888  ;;  %2900 = vpow2.f32 %v1456_v3  ;;  %v1427_v29 = vsub.f32 0.0, %v4657_v1  ;;  %v4658_v39 = vld [vmem:[#allocation62_spill] sm:$0xff]  ;;  %v1431_v61 = vsub.f32 0.0, %v4662_v10  ;;  %v512_v3 = vpop.permute.xlu0 %511  ;;  %v1480_v62 = vmul.f32 1.442695, %v1430_v15  ;;  %v4671_v33 = vld [vmem:[#allocation33_spill] sm:$0xff] }
 0x217   : > { %1945 = vmatpush.bf16.msra.mxu3 %v4651_v58  ;;  %1888 = vmatpush.bf16.msra.mxu1 %v4652_v8  ;;  %v2891_v47 = vpop.eup %2890  ;;  %v1508_v56 = vadd.f32 1.0, %v2889_v7  ;;  %2902 = vpow2.f32 %v1458_v44  ;;  %v1428_v58 = vsub.f32 0.0, %v4658_v39  ;;  %v4664_v44 = vld [vmem:[#allocation66_spill] sm:$0xff] }
 0x218   : > { %v2893_v5 = vpop.eup %2892  ;;  %v1509_v28 = vadd.f32 1.0, %v2891_v47  ;;  %v1432_v18 = vsub.f32 0.0, %v4664_v44  ;;  %v522_v39 = vpop.permute.xlu2 %521 }
 0x219   : > { %2622 = vmatmul.msk.bf16.vlgmr.msra.gmra.mxu0 %vm679_vm0, %v2695_v0  ;;  %v2895_v14 = vpop.eup %2894  ;;  %2904 = vrcp.f32 %v1508_v56  ;;  %v1510_v37 = vadd.f32 1.0, %v2893_v5  ;;  %v1476_v22 = vmul.f32 1.442695, %v1428_v58  ;;  %v4665_v5 = vld [vmem:[#allocation29_spill] sm:$0xff] }
 0x21a   : > { %1917 = vmatpush.bf16.msra.mxu2 %v4653_v32  ;;  %2626 = vmatmul.msk.bf16.vlgmr.msra.gmra.mxu1 %vm679_vm0, %v2695_v0  ;;  %v2897_v4 = vpop.eup %2896  ;;  %2906 = vrcp.f32 %v1509_v28  ;;  %v1511_v52 = vadd.f32 1.0, %v2895_v14  ;;  %v4203_v28 = vadd.f32 %v4665_v5, %v507_v43  ;;  %v4666_v14 = vld [vmem:[#allocation30_spill] sm:$0xff]  ;;  %v4682_v5 = vld [vmem:[#allocation43_spill] sm:$0xff] }
 0x21b   : > { %1946 = vmatpush.bf16.msra.mxu3 %v4654_v34  ;;  %2908 = vpow2.f32 %v1460_v41  ;;  %v2899_v48 = vpop.eup %2898  ;;  %v1512_v57 = vadd.f32 1.0, %v2897_v4  ;;  %v4206_v41 = vadd.f32 %v4666_v14, %v507_v43  ;;  %v4683_v14 = vld [vmem:[#allocation48_spill] sm:$0xff] }
 0x21c   : > { %2910 = vpow2.f32 %v1462_v25  ;;  %v2901_v55 = vpop.eup %2900  ;;  %v1513_v35 = vadd.f32 1.0, %v2899_v48  ;;  %v1482_v48 = vmul.f32 1.442695, %v1431_v61 }
 0x21d   : > { %2630 = vmatmul.msk.bf16.vlgmr.msra.gmra.mxu2 %vm679_vm0, %v2695_v0  ;;  %2912 = vrcp.f32 %v1510_v37  ;;  %v2903_v26 = vpop.eup %2902  ;;  %v1514_v60 = vadd.f32 1.0, %v2901_v55  ;;  %v4667_v37 = vld [vmem:[#allocation23_spill] sm:$0xff] }
 0x21e   : > { %2634 = vmatmul.msk.bf16.vlgmr.msra.gmra.mxu3 %vm679_vm0, %v2695_v0  ;;  %2914 = vrcp.f32 %v1511_v52  ;;  %v1515_v63 = vadd.f32 1.0, %v2903_v26  ;;  %v4668_v52 = vld [vmem:[#allocation24_spill] sm:$0xff]  ;;  %v4251_v61 = vpop.permute.xlu0 %526 }
 0x21f   : > { %v4173_v36 = vpop.eup %2904  ;;  %2916 = vpow2.f32 %v1464_v2 }
 0x220   : > { %v4176_v6 = vpop.eup %2906  ;;  %2918 = vpow2.f32 %v1466_v27  ;;  %v4669_v27 = vld [vmem:[#allocation27_spill] sm:$0xff] }
 0x221   : > { %v2909_v30 = vpop.eup %2908  ;;  %2920 = vrcp.f32 %v1512_v57  ;;  %v4211_v55 = vadd.f32 %v4669_v27, %v507_v43  ;;  %v4670_v57 = vld [vmem:[#allocation28_spill] sm:$0xff] }
 0x222   : > { %v2911_v50 = vpop.eup %2910  ;;  %2922 = vpow2.f32 %v1468_v9  ;;  %v1516_v17 = vadd.f32 1.0, %v2909_v30  ;;  %v4214_v26 = vadd.f32 %v4670_v57, %v507_v43  ;;  %v4672_v30 = vld [vmem:[#allocation67_spill] sm:$0xff]  ;;  %v1434_v43 = vsub.f32 0.0, %v4677_v24 }
 0x223   : > { %v4179_v0 = vpop.eup %2912  ;;  %2924 = vrcp.f32 %v1513_v35  ;;  %v1517_v34 = vadd.f32 1.0, %v2911_v50  ;;  %v4219_v35 = vadd.f32 %v4671_v33, %v512_v3 }
 0x224   : > { %v4182_v8 = vpop.eup %2914  ;;  %2926 = vrcp.f32 %v1514_v60  ;;  %v1484_v60 = vmul.f32 1.442695, %v1432_v18  ;;  %v1488_v33 = vmul.f32 1.442695, %v1434_v43 }
 0x225   : > { %v2917_v32 = vpop.eup %2916  ;;  %2928 = vrcp.f32 %v1515_v63  ;;  %v1433_v63 = vsub.f32 0.0, %v4672_v30 }
 0x226   : > { %2930 = vpow2.f32 %v1470_v40  ;;  %v1518_v31 = vadd.f32 1.0, %v2917_v32  ;;  %v4673_v40 = vld [vmem:[#allocation34_spill] sm:$0xff] }
 0x227   : > { %2932 = vpow2.f32 %v1472_v59  ;;  %v4225_v1 = vadd.f32 %v4673_v40, %v512_v3  ;;  %v4675_v32 = vld [vmem:[#allocation38_spill] sm:$0xff] }
 0x228   : > { %2934 = vrcp.f32 %v1516_v17 }
 0x229   : > { %2623 = vmatmul.msk.bf16.gmra.mxu0 %vm679_vm0, %v2696_v54  ;;  %2936 = vrcp.f32 %v1517_v34 }
 0x22a   : > { %2627 = vmatmul.msk.bf16.gmra.mxu1 %vm679_vm0, %v2696_v54 }
 0x22d   : > { %2631 = vmatmul.msk.bf16.gmra.mxu2 %vm679_vm0, %v2696_v54 }
 0x22e   : > { %2635 = vmatmul.msk.bf16.gmra.mxu3 %vm679_vm0, %v2696_v54  ;;  %v2919_v54 = vpop.eup %2918 }
 0x22f   : > { %v4185_v42 = vpop.eup %2920  ;;  %v1519_v19 = vadd.f32 1.0, %v2919_v54 }
 0x230   : > { %v2923_v20 = vpop.eup %2922 }
 0x231   : > { %v4188_v51 = vpop.eup %2924  ;;  %v1520_v11 = vadd.f32 1.0, %v2923_v20  ;;  %v4678_v20 = vld [vmem:[#allocation32_spill] sm:$0xff] }
 0x232   : > { %v4194_v7 = vpop.eup %2926 }
 0x233   : > { %v4200_v56 = vpop.eup %2928 }
 0x234   : > { %v2931_v25 = vpop.eup %2930 }
 0x235   : > { %v2933_v2 = vpop.eup %2932  ;;  %v1521_v58 = vadd.f32 1.0, %v2931_v25 }
 0x236   : > { %v4216_v9 = vpop.eup %2934  ;;  %v1522_v54 = vadd.f32 1.0, %v2933_v2 }
 0x237   : > { %v4222_v50 = vpop.eup %2936 }
 0x239   : > { %2624 = vmatmul.msk.bf16.gmra.mxu0 %vm679_vm0, %v2697_v38 }
 0x23a   : > { %2628 = vmatmul.msk.bf16.gmra.mxu1 %vm679_vm0, %v2697_v38 }
 0x23d   : > { %2632 = vmatmul.msk.bf16.gmra.mxu2 %vm679_vm0, %v2697_v38 }
 0x23e   : > { %2636 = vmatmul.msk.bf16.gmra.mxu3 %vm679_vm0, %v2697_v38  ;;  %v502_v38 = vpop.permute.xlu1 %501 }
 0x23f   : > { %v4191_v49 = vadd.f32 %v4661_v46, %v502_v38  ;;  %v4197_v47 = vadd.f32 %v4663_v16, %v502_v38  ;;  %v766_v4 = vadd.f32 %v4667_v37, %v502_v38  ;;  %v835_v23 = vadd.f32 %v4668_v52, %v502_v38  ;;  %v4676_v38 = vld [vmem:[#allocation31_spill] sm:$0xff] }
 0x240   : > { %v1486_v16 = vmul.f32 1.442695, %v1433_v63 }
 0x246   : > { %v517_v13 = vpop.permute.xlu1 %516 }
 0x247   : > { %v4231_v34 = vadd.f32 %v4675_v32, %v517_v13  ;;  %v4244_v15 = vadd.f32 %v4679_v45, %v517_v13 }
 0x249   : > { %2625 = vmatmul.msk.bf16.gmra.mxu0 %vm679_vm0, %v2698_v21 }
 0x24a   : > { %2629 = vmatmul.msk.bf16.gmra.mxu1 %vm679_vm0, %v2698_v21 }
 0x24d   : > { %2633 = vmatmul.msk.bf16.gmra.mxu2 %vm679_vm0, %v2698_v21 }
 0x24e   : > { %2637 = vmatmul.msk.bf16.gmra.mxu3 %vm679_vm0, %v2698_v21  ;;  %v1474_v21 = vmul.f32 1.442695, %v1427_v29  ;;  %v4674_v29 = vld [vmem:[#allocation37_spill] sm:$0xff] }
 0x24f   : > { %v4228_v59 = vadd.f32 %v4674_v29, %v517_v13  ;;  %v4685_v29 = vld [vmem:[#allocation70_spill] sm:$0xff] }
 0x250   : > { %2938 = vpow2.f32 %v1474_v21  ;;  %v4234_v21 = vadd.f32 %v4676_v38, %v512_v3  ;;  %v4687_v38 = vld [vmem:[#allocation49_spill] sm:$0xff] }
 0x251   : > { %2940 = vpow2.f32 %v1476_v22  ;;  %v4238_v22 = vld [vmem:[%s3211_s13] sm:$0xff] }
 0x252   : > { %2942 = vrcp.f32 %v1518_v31  ;;  %v4241_v31 = vadd.f32 %v4678_v20, %v512_v3  ;;  %v4259_v3 = vadd.f32 %v4682_v5, %v522_v39  ;;  %v2033_v63 = vunpack.c.h.bf16 %v4238_v22 }
 0x253   : > { %2944 = vrcp.f32 %v1519_v19  ;;  %v4680_v19 = vld [vmem:[#allocation42_spill] sm:$0xff] }
 0x254   : > { %2946 = vpow2.f32 %v1478_v12  ;;  %v4249_v10 = vadd.f32 %v4680_v19, %v522_v39  ;;  %v4681_v12 = vld [vmem:[#allocation36_spill] sm:$0xff] }
 0x255   : > { %2948 = vrcp.f32 %v1520_v11  ;;  %v4254_v44 = vadd.f32 %v4681_v12, %v517_v13  ;;  %v4263_v11 = vadd.f32 %v4683_v14, %v4251_v61  ;;  %v4684_v13 = vld [vmem:[#allocation69_spill] sm:$0xff]  ;;  %v4689_v19 = vld [vmem:[#allocation40_spill] sm:$0xff] }
 0x256   : > { %v2939_v17 = vpop.eup %2938  ;;  %2950 = vpow2.f32 %v1480_v62 }
 0x257   : > { %v2941_v53 = vpop.eup %2940  ;;  %2952 = vpow2.f32 %v1482_v48  ;;  %v1523_v25 = vadd.f32 1.0, %v2939_v17  ;;  %v2032_v48 = vunpack.c.l.bf16 %v4238_v22  ;;  %v4686_v17 = vld [vmem:[#allocation71_spill] sm:$0xff] }
 0x258   : > { %v4246_v46 = vpop.eup %2942  ;;  %2954 = vpow2.f32 %v1484_v60  ;;  %v1524_v52 = vadd.f32 1.0, %v2941_v53  ;;  %v1435_v60 = vsub.f32 0.0, %v4684_v13  ;;  %v1437_v32 = vsub.f32 0.0, %v4686_v17  ;;  %v4688_v22 = vld [vmem:[#allocation39_spill] sm:$0xff] }
 0x259   : > { %v4256_v18 = vpop.eup %2944  ;;  %2956 = vrcp.f32 %v1521_v58  ;;  %v1436_v58 = vsub.f32 0.0, %v4685_v29  ;;  %v4274_v53 = vadd.f32 %v4687_v38, %v4251_v61  ;;  %v4278_v45 = vadd.f32 %v4688_v22, %v522_v39 }
 0x25a   : > { %v2947_v37 = vpop.eup %2946  ;;  %2958 = vrcp.f32 %v1522_v54  ;;  %v1490_v5 = vmul.f32 1.442695, %v1435_v60  ;;  %v4296_v13 = vmul.f32 1.442695, %v1437_v32 }
 0x25b   : > { %v4266_v57 = vpop.eup %2948  ;;  %2960 = vpow2.f32 %v1486_v16  ;;  %v1525_v24 = vadd.f32 1.0, %v2947_v37  ;;  %v4281_v16 = vadd.f32 %v4689_v19, %v522_v39 }
 0x25c   : > { %v2951_v40 = vpop.eup %2950  ;;  %2962 = vrcp.f32 %v1523_v25  ;;  %v4690_v25 = vld [vmem:[#allocation44_spill] sm:$0xff] }
 0x25d   : > { %2964 = vrcp.f32 %v1524_v52  ;;  %v4290_v37 = vadd.f32 %v4690_v25, %v4251_v61  ;;  %v4691_v25 = vld [vmem:[#allocation72_spill] sm:$0xff] }
 0x25e   : > { %2966 = vpow2.f32 %v1488_v33 }
 0x25f   : > { %2968 = vrcp.f32 %v1525_v24 }
 0x296   : > { %v1861_v62 = vpop.f32.mrf.mxu0 }
 0x297   : > { %v1968_v2 = vadd.f32 %v1861_v62, %v766_v4  ;;  %v1890_v27 = vpop.f32.mrf.mxu1  ;;  %v2953_v4 = vpop.eup %2952  ;;  %v4286_v62 = vld [vmem:[%s3211_s13 + $0x10] sm:$0xff] }
 0x298   : > { %v1969_v30 = vadd.f32 %v1890_v27, %v835_v23  ;;  %v2955_v20 = vpop.eup %2954  ;;  %v4294_v27 = vmul.f32 1.442695, %v1436_v58  ;;  %v1527_v33 = vadd.f32 1.0, %v2953_v4  ;;  %v2037_v38 = vunpack.c.h.bf16 %v4286_v62 }
 0x299   : > { %v2000_v54 = vmax.f32 %v1968_v2, 0.0  ;;  %v4283_v12 = vpop.eup %2956  ;;  %v1526_v2 = vadd.f32 1.0, %v2951_v40  ;;  %v1528_v60 = vadd.f32 1.0, %v2955_v20 }
 0x29a   : > { %v2001_v43 = vmax.f32 %v1969_v30, 0.0  ;;  %v4292_v52 = vpop.eup %2958  ;;  %v4300_v30 = vld [vmem:[%s3211_s13 + $0x8] sm:$0xff] }
 0x29b   : > { %v2064_v23 = vsub.f32 %v2000_v54, %v2032_v48  ;;  %v2961_v40 = vpop.eup %2960  ;;  %2970 = vrcp.f32 %v1526_v2 }
 0x29c   : > { %v2065_v14 = vsub.f32 %v2001_v43, %v2033_v63  ;;  %v4311_v24 = vpop.eup %2962  ;;  %2972 = vrcp.f32 %v1527_v33 }
 0x29d   : > { %v2096_v39 = vmul.f32 %v4173_v36, %v2064_v23  ;;  %v2036_v36 = vunpack.c.l.bf16 %v4286_v62  ;;  %v2034_v23 = vunpack.c.l.bf16 %v4300_v30  ;;  %2974 = vpow2.f32 %v1490_v5 }
 0x29e   : > { %v2097_v29 = vmul.f32 %v4176_v6, %v2065_v14  ;;  %v1863_v17 = vpop.f32.mrf.mxu0  ;;  %v2035_v14 = vunpack.c.h.bf16 %v4300_v30  ;;  %2976 = vrcp.f32 %v1528_v60 }
 0x29f   : > { %v2128_v58 = vadd.f32 %v2096_v39, %v2032_v48  ;;  %v1972_v32 = vadd.f32 %v1863_v17, %v4211_v55  ;;  %v1892_v54 = vpop.f32.mrf.mxu1  ;;  %v4316_v48 = vpop.eup %2964  ;;  %v1438_v39 = vsub.f32 0.0, %v4691_v25 }
 0x2a0   : > { %v1919_v4 = vpop.f32.mrf.mxu2  ;;  %v2129_v43 = vadd.f32 %v2097_v29, %v2033_v63  ;;  %v1973_v20 = vadd.f32 %v1892_v54, %v4214_v26  ;;  %v2967_v62 = vpop.eup %2966  ;;  %v1529_v63 = vadd.f32 1.0, %v2961_v40  ;;  %v4324_v54 = vld [vmem:[%s3211_s13 + $0x20] sm:$0xff]  ;;  %v4693_v40 = vld [vmem:[#allocation74_spill] sm:$0xff] }
 0x2a1   : > { %v1970_v6 = vadd.f32 %v1919_v4, %v4191_v49  ;;  %v1948_v22 = vpop.f32.mrf.mxu3  ;;  %2160 = vst [vmem:[%s4305_s20] sm:$0xff] %v2128_v58  ;;  %v2004_v55 = vmax.f32 %v1972_v32, 0.0  ;;  %v4326_v2 = vpop.eup %2968  ;;  %v4330_v4 = vld [vmem:[%s3211_s13 + $0x18] sm:$0xff]  ;;  %v1530_v33 = vadd.f32 1.0, %v2967_v62  ;;  %v2041_v60 = vunpack.c.h.bf16 %v4324_v54 }
 0x2a2   : > { %v1971_v19 = vadd.f32 %v1948_v22, %v4197_v47  ;;  %2161 = vst [vmem:[%s4305_s20 + $0x8] sm:$0xff] %v2129_v43  ;;  %v2005_v26 = vmax.f32 %v1973_v20, 0.0  ;;  %v4692_v47 = vld [vmem:[#allocation73_spill] sm:$0xff]  ;;  %v1440_v43 = vsub.f32 0.0, %v4693_v40  ;;  %2978 = vrcp.f32 %v1529_v63 }
 0x2a3   : > { %v2002_v49 = vmax.f32 %v1970_v6, 0.0  ;;  %v2068_v29 = vsub.f32 %v2004_v55, %v2036_v36  ;;  %v1439_v58 = vsub.f32 0.0, %v4692_v47  ;;  %2980 = vpow2.f32 %v4294_v27 }
 0x2a4   : > { %v2003_v17 = vmax.f32 %v1971_v19, 0.0  ;;  %v2069_v30 = vsub.f32 %v2005_v26, %v2037_v38  ;;  %v2040_v19 = vunpack.c.l.bf16 %v4324_v54  ;;  %v4338_v26 = vpop.eup %2970  ;;  %2982 = vpow2.f32 %v4296_v13 }
 0x2a5   : > { %v2066_v32 = vsub.f32 %v2002_v49, %v2034_v23  ;;  %v2100_v5 = vmul.f32 %v4185_v42, %v2068_v29  ;;  %v2038_v29 = vunpack.c.l.bf16 %v4330_v4  ;;  %2984 = vrcp.f32 %v1530_v33 }
 0x2a6   : > { %v2067_v20 = vsub.f32 %v2003_v17, %v2035_v14  ;;  %v2101_v6 = vmul.f32 %v4188_v51, %v2069_v30  ;;  %v1866_v55 = vpop.f32.mrf.mxu0  ;;  %v4343_v51 = vpop.eup %2972 }
 0x2a7   : > { %v2098_v22 = vmul.f32 %v4179_v0, %v2066_v32  ;;  %v2132_v49 = vadd.f32 %v2100_v5, %v2036_v36  ;;  %v1976_v25 = vadd.f32 %v1866_v55, %v4234_v21  ;;  %v1895_v47 = vpop.f32.mrf.mxu1  ;;  %v4347_v36 = vpop.eup %2974  ;;  %v2039_v5 = vunpack.c.h.bf16 %v4330_v4  ;;  %v4359_v55 = vld [vmem:[%s3211_s13 + $0x30] sm:$0xff] }
 0x2a8   : > { %v2099_v62 = vmul.f32 %v4182_v8, %v2067_v20  ;;  %v1921_v42 = vpop.f32.mrf.mxu2  ;;  %v2133_v0 = vadd.f32 %v2101_v6, %v2037_v38  ;;  %v1977_v30 = vadd.f32 %v1895_v47, %v4241_v31  ;;  %v4352_v20 = vpop.eup %2976  ;;  %v1496_v31 = vmul.f32 1.442695, %v1438_v39 }
 0x2a9   : > { %v2130_v17 = vadd.f32 %v2098_v22, %v2034_v23  ;;  %v1974_v54 = vadd.f32 %v1921_v42, %v4203_v28  ;;  %v1950_v32 = vpop.f32.mrf.mxu3  ;;  %2164 = vst [vmem:[%s4305_s20 + $0x20] sm:$0xff] %v2132_v49  ;;  %v2008_v21 = vmax.f32 %v1976_v25, 0.0  ;;  %v4694_v23 = vld [vmem:[#allocation75_spill] sm:$0xff]  ;;  %v4364_v49 = vld [vmem:[%s3211_s13 + $0x28] sm:$0xff]  ;;  %v1500_v39 = vmul.f32 1.442695, %v1440_v43 }
 0x2aa   : > { %v2131_v8 = vadd.f32 %v2099_v62, %v2035_v14  ;;  %v1975_v40 = vadd.f32 %v1950_v32, %v4206_v41  ;;  %2165 = vst [vmem:[%s4305_s20 + $0x28] sm:$0xff] %v2133_v0  ;;  %v2009_v28 = vmax.f32 %v1977_v30, 0.0  ;;  %v1441_v6 = vsub.f32 0.0, %v4694_v23 }
 0x2ab   : > { %v2006_v38 = vmax.f32 %v1974_v54, 0.0  ;;  %2162 = vst [vmem:[%s4305_s20 + $0x10] sm:$0xff] %v2130_v17  ;;  %v2072_v14 = vsub.f32 %v2008_v21, %v2040_v19  ;;  %v1498_v41 = vmul.f32 1.442695, %v1439_v58  ;;  %v2044_v0 = vunpack.c.l.bf16 %v4359_v55  ;;  %v4374_v54 = vpop.eup %2978 }
 0x2ac   : > { %v2007_v22 = vmax.f32 %v1975_v40, 0.0  ;;  %2163 = vst [vmem:[%s4305_s20 + $0x18] sm:$0xff] %v2131_v8  ;;  %v2073_v4 = vsub.f32 %v2009_v28, %v2041_v60  ;;  %v2045_v13 = vunpack.c.h.bf16 %v4359_v55  ;;  %v2043_v28 = vunpack.c.h.bf16 %v4364_v49 }
 0x2ad   : > { %v2070_v63 = vsub.f32 %v2006_v38, %v2038_v29  ;;  %v2104_v62 = vmul.f32 %v4216_v9, %v2072_v14  ;;  %v2042_v9 = vunpack.c.l.bf16 %v4364_v49  ;;  %2986 = vpow2.f32 %v1496_v31 }
 0x2ae   : > { %v2071_v27 = vsub.f32 %v2007_v22, %v2039_v5  ;;  %v2105_v25 = vmul.f32 %v4222_v50, %v2073_v4  ;;  %v1868_v42 = vpop.f32.mrf.mxu0  ;;  %2988 = vpow2.f32 %v1498_v41  ;;  %v4390_v22 = vld [vmem:[%s3211_s13 + $0x40] sm:$0xff]  ;;  %v1531_v55 = vadd.f32 1.0, %v4347_v36 }
 0x2af   : > { %v2102_v47 = vmul.f32 %v4194_v7, %v2070_v63  ;;  %v2136_v58 = vadd.f32 %v2104_v62, %v2040_v19  ;;  %v1980_v30 = vadd.f32 %v1868_v42, %v4244_v15  ;;  %v1897_v33 = vpop.f32.mrf.mxu1  ;;  %v2981_v19 = vpop.eup %2980  ;;  %2990 = vpow2.f32 %v1500_v39  ;;  %v4395_v63 = vld [vmem:[%s3211_s13 + $0x38] sm:$0xff] }
 0x2b0   : > { %v2103_v17 = vmul.f32 %v4200_v56, %v2071_v27  ;;  %v1924_v43 = vpop.f32.mrf.mxu2  ;;  %v2137_v50 = vadd.f32 %v2105_v25, %v2041_v60  ;;  %v1981_v32 = vadd.f32 %v1897_v33, %v4254_v44  ;;  %v2983_v38 = vpop.eup %2982  ;;  %v1532_v49 = vadd.f32 1.0, %v2981_v19  ;;  %v4697_v19 = vld [vmem:[#allocation50_spill] sm:$0xff] }
 0x2b1   : > { %v2134_v7 = vadd.f32 %v2102_v47, %v2038_v29  ;;  %v1978_v8 = vadd.f32 %v1924_v43, %v4219_v35  ;;  %v1953_v21 = vpop.f32.mrf.mxu3  ;;  %2168 = vst [vmem:[%s4305_s20 + $0x40] sm:$0xff] %v2136_v58  ;;  %v2012_v15 = vmax.f32 %v1980_v30, 0.0  ;;  %v4695_v35 = vld [vmem:[#allocation45_spill] sm:$0xff]  ;;  %v4386_v23 = vpop.eup %2984  ;;  %v2048_v42 = vunpack.c.l.bf16 %v4390_v22 }
 0x2b2   : > { %v2135_v56 = vadd.f32 %v2103_v17, %v2039_v5  ;;  %v1979_v40 = vadd.f32 %v1953_v21, %v4225_v1  ;;  %2169 = vst [vmem:[%s4305_s20 + $0x48] sm:$0xff] %v2137_v50  ;;  %v2013_v60 = vmax.f32 %v1981_v32, 0.0  ;;  %v4384_v29 = vadd.f32 %v4695_v35, %v4251_v61  ;;  %v4696_v61 = vld [vmem:[#allocation76_spill] sm:$0xff] }
 0x2b3   : > { %v2010_v44 = vmax.f32 %v1978_v8, 0.0  ;;  %v1502_v5 = vmul.f32 1.442695, %v1441_v6  ;;  %2166 = vst [vmem:[%s4305_s20 + $0x30] sm:$0xff] %v2134_v7  ;;  %v2076_v14 = vsub.f32 %v2012_v15, %v2044_v0  ;;  %v1442_v62 = vsub.f32 0.0, %v4696_v61  ;;  %v2987_v43 = vpop.eup %2986  ;;  %v4698_v15 = vld [vmem:[#allocation77_spill] sm:$0xff] }
 0x2b4   : > { %v2011_v1 = vmax.f32 %v1979_v40, 0.0  ;;  %2167 = vst [vmem:[%s4305_s20 + $0x38] sm:$0xff] %v2135_v56  ;;  %v2077_v31 = vsub.f32 %v2013_v60, %v2045_v13  ;;  %v2049_v36 = vunpack.c.h.bf16 %v4390_v22  ;;  %v4408_v8 = vpop.eup %2988  ;;  %2992 = vrcp.f32 %v1531_v55  ;;  %v4427_v22 = vld [vmem:[%s3211_s13 + $0x48] sm:$0xff] }
 0x2b5   : > { %v2074_v4 = vsub.f32 %v2010_v44, %v2042_v9  ;;  %v2108_v27 = vmul.f32 %v4266_v57, %v2076_v14  ;;  %v2046_v57 = vunpack.c.l.bf16 %v4395_v63  ;;  %2994 = vpow2.f32 %v1502_v5 }
 0x2b6   : > { %v2075_v41 = vsub.f32 %v2011_v1, %v2043_v28  ;;  %v2109_v6 = vmul.f32 %v4283_v12, %v2077_v31  ;;  %v1871_v47 = vpop.f32.mrf.mxu0  ;;  %v1443_v40 = vsub.f32 0.0, %v4698_v15  ;;  %v1533_v44 = vadd.f32 1.0, %v2983_v38 }
 0x2b7   : > { %v2106_v25 = vmul.f32 %v4246_v46, %v2074_v4  ;;  %v2140_v39 = vadd.f32 %v2108_v27, %v2044_v0  ;;  %v1984_v17 = vadd.f32 %v1871_v47, %v4278_v45  ;;  %v1900_v30 = vpop.f32.mrf.mxu1  ;;  %v4410_v0 = vpop.permute.xlu1 %531  ;;  %v1504_v35 = vmul.f32 1.442695, %v1442_v62 }
 0x2b8   : > { %v2107_v58 = vmul.f32 %v4256_v18, %v2075_v41  ;;  %v1926_v33 = vpop.f32.mrf.mxu2  ;;  %v2141_v12 = vadd.f32 %v2109_v6, %v2045_v13  ;;  %v1985_v46 = vadd.f32 %v1900_v30, %v4281_v16  ;;  %v2047_v13 = vunpack.c.h.bf16 %v4395_v63 }
 0x2b9   : > { %v2138_v50 = vadd.f32 %v2106_v25, %v2042_v9  ;;  %v1982_v7 = vadd.f32 %v1926_v33, %v4228_v59  ;;  %v1955_v32 = vpop.f32.mrf.mxu3  ;;  %2172 = vst [vmem:[%s4305_s20 + $0x60] sm:$0xff] %v2140_v39  ;;  %v2016_v45 = vmax.f32 %v1984_v17, 0.0  ;;  %v2991_v9 = vpop.eup %2990  ;;  %v4418_v56 = vadd.f32 %v4697_v19, %v4410_v0 }
 0x2ba   : > { %v2139_v18 = vadd.f32 %v2107_v58, %v2043_v28  ;;  %v1983_v21 = vadd.f32 %v1955_v32, %v4231_v34  ;;  %2173 = vst [vmem:[%s4305_s20 + $0x68] sm:$0xff] %v2141_v12  ;;  %v2017_v59 = vmax.f32 %v1985_v46, 0.0  ;;  %v4423_v34 = vld [vmem:[%s3211_s13 + $0x50] sm:$0xff]  ;;  %2996 = vrcp.f32 %v1532_v49  ;;  %v4437_v47 = vpop.eup %2992 }
 0x2bb   : > { %v2014_v16 = vmax.f32 %v1982_v7, 0.0  ;;  %2170 = vst [vmem:[%s4305_s20 + $0x50] sm:$0xff] %v2138_v50  ;;  %v2080_v28 = vsub.f32 %v2016_v45, %v2048_v42  ;;  %v1534_v55 = vadd.f32 1.0, %v2987_v43  ;;  %v2052_v27 = vunpack.c.l.bf16 %v4423_v34  ;;  %v4449_v7 = vld [vmem:[%s3211_s13 + $0x60] sm:$0xff]  ;;  %v4454_v45 = vld [vmem:[%s3211_s13 + $0x58] sm:$0xff] }
 0x2bc   : > { %v2015_v60 = vmax.f32 %v1983_v21, 0.0  ;;  %2171 = vst [vmem:[%s4305_s20 + $0x58] sm:$0xff] %v2139_v18  ;;  %v2081_v14 = vsub.f32 %v2017_v59, %v2049_v36  ;;  %v2053_v38 = vunpack.c.h.bf16 %v4423_v34  ;;  %v2051_v33 = vunpack.c.h.bf16 %v4427_v22 }
 0x2bd   : > { %v2078_v1 = vsub.f32 %v2014_v16, %v2046_v57  ;;  %v2112_v31 = vmul.f32 %v4316_v48, %v2080_v28  ;;  %v2050_v48 = vunpack.c.l.bf16 %v4427_v22  ;;  %2998 = vrcp.f32 %v1533_v44 }
 0x2be   : > { %v2079_v4 = vsub.f32 %v2015_v60, %v2047_v13  ;;  %v2113_v5 = vmul.f32 %v4326_v2, %v2081_v14  ;;  %v1873_v61 = vpop.f32.mrf.mxu0  ;;  %3000 = vpow2.f32 %v1504_v35  ;;  %v1506_v12 = vmul.f32 1.442695, %v1443_v40 }
 0x2bf   : > { %v2110_v63 = vmul.f32 %v4292_v52, %v2078_v1  ;;  %v2144_v62 = vadd.f32 %v2112_v31, %v2048_v42  ;;  %v1988_v6 = vadd.f32 %v1873_v61, %v4290_v37  ;;  %v1902_v49 = vpop.f32.mrf.mxu1  ;;  %v2995_v42 = vpop.eup %2994  ;;  %3002 = vrcp.f32 %v1534_v55 }
 0x2c0   : > { %v2111_v41 = vmul.f32 %v4311_v24, %v2079_v4  ;;  %v1929_v25 = vpop.f32.mrf.mxu2  ;;  %v2145_v2 = vadd.f32 %v2113_v5, %v2049_v36  ;;  %v1989_v39 = vadd.f32 %v1902_v49, %v4384_v29  ;;  %v4699_v29 = vld [vmem:[#allocation51_spill] sm:$0xff]  ;;  %v2997_v43 = vpop.eup %2996  ;;  %v1536_v21 = vadd.f32 1.0, %v2991_v9 }
 0x2c1   : > { %v2142_v52 = vadd.f32 %v2110_v63, %v2046_v57  ;;  %v1986_v58 = vadd.f32 %v1929_v25, %v4249_v10  ;;  %v1958_v17 = vpop.f32.mrf.mxu3  ;;  %2176 = vst [vmem:[%s4305_s20 + $0x80] sm:$0xff] %v2144_v62  ;;  %v2020_v37 = vmax.f32 %v1988_v6, 0.0  ;;  %v850_v10 = vadd.f32 %v4699_v29, %v4410_v0  ;;  %v4465_v4 = vpop.permute.xlu2 %536 }
 0x2c2   : > { %v2143_v24 = vadd.f32 %v2111_v41, %v2047_v13  ;;  %v1987_v30 = vadd.f32 %v1958_v17, %v4259_v3  ;;  %2177 = vst [vmem:[%s4305_s20 + $0x88] sm:$0xff] %v2145_v2  ;;  %v2021_v36 = vmax.f32 %v1989_v39, 0.0  ;;  %v1535_v3 = vadd.f32 1.0, %v4408_v8  ;;  %v4701_v41 = vld [vmem:[#allocation53_spill] sm:$0xff] }
 0x2c3   : > { %v2018_v57 = vmax.f32 %v1986_v58, 0.0  ;;  %2174 = vst [vmem:[%s4305_s20 + $0x70] sm:$0xff] %v2142_v52  ;;  %v2084_v50 = vsub.f32 %v2020_v37, %v2052_v27  ;;  %v1537_v13 = vadd.f32 1.0, %v2995_v42  ;;  %v2056_v28 = vunpack.c.l.bf16 %v4449_v7  ;;  %v2999_v14 = vpop.eup %2998  ;;  %v4702_v52 = vld [vmem:[#allocation54_spill] sm:$0xff] }
 0x2c4   : > { %v2019_v46 = vmax.f32 %v1987_v30, 0.0  ;;  %2175 = vst [vmem:[%s4305_s20 + $0x78] sm:$0xff] %v2143_v24  ;;  %v2085_v32 = vsub.f32 %v2021_v36, %v2053_v38  ;;  %v2057_v8 = vunpack.c.h.bf16 %v4449_v7  ;;  %v3001_v31 = vpop.eup %3000  ;;  %v2055_v63 = vunpack.c.h.bf16 %v4454_v45  ;;  %v352_v58 = vld [vmem:[%s3211_s13 + $0x68] sm:$0xff]  ;;  %v4703_v24 = vld [vmem:[#allocation55_spill] sm:$0xff] }
 0x2c5   : > { %v2082_v18 = vsub.f32 %v2018_v57, %v2050_v48  ;;  %v2116_v59 = vmul.f32 %v4352_v20, %v2084_v50  ;;  %v2054_v20 = vunpack.c.l.bf16 %v4454_v45  ;;  %v4470_v61 = vpop.eup %3002  ;;  %3004 = vpow2.f32 %v1506_v12 }
 0x2c6   : > { %v2083_v16 = vsub.f32 %v2019_v46, %v2051_v33  ;;  %v2117_v19 = vmul.f32 %v4374_v54, %v2085_v32  ;;  %v1876_v40 = vpop.f32.mrf.mxu0  ;;  %v988_v6 = vadd.f32 %v4701_v41, %v4410_v0  ;;  %3006 = vrcp.f32 %v1535_v3 }
 0x2c7   : > { %v2114_v15 = vmul.f32 %v4338_v26, %v2082_v18  ;;  %v2148_v60 = vadd.f32 %v2116_v59, %v2052_v27  ;;  %v1992_v44 = vadd.f32 %v1876_v40, %v4418_v56  ;;  %v1905_v9 = vpop.f32.mrf.mxu1  ;;  %v4700_v27 = vld [vmem:[#allocation52_spill] sm:$0xff]  ;;  %3008 = vrcp.f32 %v1536_v21 }
 0x2c8   : > { %v2115_v34 = vmul.f32 %v4343_v51, %v2083_v16  ;;  %v1931_v35 = vpop.f32.mrf.mxu2  ;;  %v2149_v54 = vadd.f32 %v2117_v19, %v2053_v38  ;;  %v1993_v26 = vadd.f32 %v1905_v9, %v850_v10  ;;  %v919_v38 = vadd.f32 %v4700_v27, %v4410_v0 }
 0x2c9   : > { %v2146_v1 = vadd.f32 %v2114_v15, %v2050_v48  ;;  %v1990_v22 = vadd.f32 %v1931_v35, %v4263_v11  ;;  %v1960_v55 = vpop.f32.mrf.mxu3  ;;  %2180 = vst [vmem:[%s4305_s20 + $0xa0] sm:$0xff] %v2148_v60  ;;  %v2024_v56 = vmax.f32 %v1992_v44, 0.0  ;;  %v783_v39 = vadd.f32 %v4702_v52, %v4465_v4 }
 0x2ca   : > { %v2147_v51 = vadd.f32 %v2115_v34, %v2051_v33  ;;  %v1991_v5 = vadd.f32 %v1960_v55, %v4274_v53  ;;  %2181 = vst [vmem:[%s4305_s20 + $0xa8] sm:$0xff] %v2149_v54  ;;  %v2025_v11 = vmax.f32 %v1993_v26, 0.0  ;;  %v353_v53 = vld [vmem:[%s3211_s13 + $0x70] sm:$0xff]  ;;  %3010 = vrcp.f32 %v1537_v13  ;;  %v354_v54 = vld [vmem:[%s3211_s13 + $0x78] sm:$0xff] }
 0x2cb   : > { %v2022_v62 = vmax.f32 %v1990_v22, 0.0  ;;  %2178 = vst [vmem:[%s4305_s20 + $0x90] sm:$0xff] %v2146_v1  ;;  %v2088_v49 = vsub.f32 %v2024_v56, %v2056_v28  ;;  %v852_v37 = vadd.f32 %v4703_v24, %v4465_v4  ;;  %v2060_v36 = vunpack.c.l.bf16 %v353_v53  ;;  %v4704_v1 = vld [vmem:[#allocation57_spill] sm:$0xff] }
 0x2cc   : > { %v2023_v25 = vmax.f32 %v1991_v5, 0.0  ;;  %2179 = vst [vmem:[%s4305_s20 + $0x98] sm:$0xff] %v2147_v51  ;;  %v2089_v48 = vsub.f32 %v2025_v11, %v2057_v8  ;;  %v2061_v57 = vunpack.c.h.bf16 %v353_v53  ;;  %v2058_v7 = vunpack.c.l.bf16 %v352_v58 }
 0x2cd   : > { %v2086_v2 = vsub.f32 %v2022_v62, %v2054_v20  ;;  %v2120_v17 = vmul.f32 %v2997_v43, %v2088_v49  ;;  %v3005_v43 = vpop.eup %3004  ;;  %v2059_v19 = vunpack.c.h.bf16 %v352_v58  ;;  %v1538_v15 = vadd.f32 1.0, %v3001_v31  ;;  %v4705_v31 = vld [vmem:[#allocation58_spill] sm:$0xff] }
 0x2ce   : > { %v2087_v42 = vsub.f32 %v2023_v25, %v2055_v63  ;;  %v2121_v0 = vmul.f32 %v2999_v14, %v2089_v48  ;;  %v1878_v33 = vpop.f32.mrf.mxu0  ;;  %v921_v26 = vadd.f32 %v4704_v1, %v4465_v4  ;;  %v990_v51 = vadd.f32 %v4705_v31, %v4465_v4 }
 0x2cf   : > { %v2118_v30 = vmul.f32 %v4386_v23, %v2086_v2  ;;  %v2152_v29 = vadd.f32 %v2120_v17, %v2056_v28  ;;  %v1996_v12 = vadd.f32 %v1878_v33, %v783_v39  ;;  %v1907_v50 = vpop.f32.mrf.mxu1  ;;  %v3007_v23 = vpop.eup %3006  ;;  %3012 = vrcp.f32 %v1538_v15 }
 0x2d0   : > { %v2119_v10 = vmul.f32 %v4437_v47, %v2087_v42  ;;  %v1934_v46 = vpop.f32.mrf.mxu2  ;;  %v2153_v3 = vadd.f32 %v2121_v0, %v2057_v8  ;;  %v1997_v18 = vadd.f32 %v1907_v50, %v852_v37  ;;  %v3009_v47 = vpop.eup %3008  ;;  %v1539_v8 = vadd.f32 1.0, %v3005_v43 }
 0x2d1   : > { %v2150_v32 = vadd.f32 %v2118_v30, %v2054_v20  ;;  %v1994_v45 = vadd.f32 %v1934_v46, %v919_v38  ;;  %v1963_v21 = vpop.f32.mrf.mxu3  ;;  %2184 = vst [vmem:[%s4305_s20 + $0xc0] sm:$0xff] %v2152_v29  ;;  %v2028_v59 = vmax.f32 %v1996_v12, 0.0  ;;  %v3011_v60 = vpop.eup %3010  ;;  %v2062_v62 = vunpack.c.l.bf16 %v354_v54 }
 0x2d2   : > { %v2151_v13 = vadd.f32 %v2119_v10, %v2055_v63  ;;  %v1995_v16 = vadd.f32 %v1963_v21, %v988_v6  ;;  %2185 = vst [vmem:[%s4305_s20 + $0xc8] sm:$0xff] %v2153_v3  ;;  %v2029_v40 = vmax.f32 %v1997_v18, 0.0  ;;  %3014 = vrcp.f32 %v1539_v8 }
 0x2d3   : > { %v2026_v28 = vmax.f32 %v1994_v45, 0.0  ;;  %2182 = vst [vmem:[%s4305_s20 + $0xb0] sm:$0xff] %v2150_v32  ;;  %v2092_v34 = vsub.f32 %v2028_v59, %v2060_v36 }
 0x2d4   : > { %v2027_v44 = vmax.f32 %v1995_v16, 0.0  ;;  %2183 = vst [vmem:[%s4305_s20 + $0xb8] sm:$0xff] %v2151_v13  ;;  %v2093_v9 = vsub.f32 %v2029_v40, %v2061_v57 }
 0x2d5   : > { %v2090_v35 = vsub.f32 %v2026_v28, %v2058_v7  ;;  %v2124_v20 = vmul.f32 %v3009_v47, %v2092_v34  ;;  %v3013_v53 = vpop.eup %3012 }
 0x2d6   : > { %v2091_v14 = vsub.f32 %v2027_v44, %v2059_v19  ;;  %v2125_v22 = vmul.f32 %v3011_v60, %v2093_v9 }
 0x2d7   : > { %v2122_v55 = vmul.f32 %v4470_v61, %v2090_v35  ;;  %v2156_v56 = vadd.f32 %v2124_v20, %v2060_v36  ;;  %v2063_v61 = vunpack.c.h.bf16 %v354_v54 }
 0x2d8   : > { %v2123_v5 = vmul.f32 %v3007_v23, %v2091_v14  ;;  %v1936_v63 = vpop.f32.mrf.mxu2  ;;  %v2157_v27 = vadd.f32 %v2125_v22, %v2061_v57  ;;  %v3015_v2 = vpop.eup %3014 }
 0x2d9   : > { %v2154_v38 = vadd.f32 %v2122_v55, %v2058_v7  ;;  %v1998_v11 = vadd.f32 %v1936_v63, %v921_v26  ;;  %v1965_v41 = vpop.f32.mrf.mxu3  ;;  %2188 = vst [vmem:[%s4305_s20 + $0xe0] sm:$0xff] %v2156_v56 }
 0x2da   : > { %v2155_v6 = vadd.f32 %v2123_v5, %v2059_v19  ;;  %v1999_v49 = vadd.f32 %v1965_v41, %v990_v51  ;;  %2189 = vst [vmem:[%s4305_s20 + $0xe8] sm:$0xff] %v2157_v27 }
 0x2db   : > { %v2030_v25 = vmax.f32 %v1998_v11, 0.0  ;;  %2186 = vst [vmem:[%s4305_s20 + $0xd0] sm:$0xff] %v2154_v38 }
 0x2dc   : > { %v2031_v4 = vmax.f32 %v1999_v49, 0.0  ;;  %2187 = vst [vmem:[%s4305_s20 + $0xd8] sm:$0xff] %v2155_v6 }
 0x2dd   : > { %v2094_v48 = vsub.f32 %v2030_v25, %v2062_v62 }
 0x2de   : > { %v2095_v52 = vsub.f32 %v2031_v4, %v2063_v61 }
 0x2df   : > { %v2126_v39 = vmul.f32 %v3013_v53, %v2094_v48 }
 0x2e0   : > { %v2127_v58 = vmul.f32 %v3015_v2, %v2095_v52 }
 0x2e1   : > { %v2158_v17 = vadd.f32 %v2126_v39, %v2062_v62 }
 0x2e2   : > { %v2159_v42 = vadd.f32 %v2127_v58, %v2063_v61 }
 0x2e3   : > { %2190 = vst [vmem:[%s4305_s20 + $0xf0] sm:$0xff] %v2158_v17 }
 0x2e4   : > { %2191 = vst [vmem:[%s4305_s20 + $0xf8] sm:$0xff] %v2159_v42 }
 0x2e5 PF: > { %s19_s26 = sadd.s32 1, %s3096_s26   ;;  %s4706_s21 = smov %s3080_s22 }
 0x2e6   : > { %p16_p0 = scmp.ge.s32.totalorder %s19_s26, 4   ;;  %s4707_s22 = smov %s3084_s23 }
 0x2e7   : > { %s4708_s23 = smov %s3185_s9  ;;  %s4709_s24 = smov %s3092_s25 }
 0x2e8   : > { %s4710_s25 = smov %s4712_s28  ;;  %18 = sbr.rel (!%p16_p0) target bundleno = 4 (0x4), region = 87 }
 0x2ed   :  { %2222 = vsyncpa [#allocation3], 1 }
 0x2ee   :  { %2224 = vsyncpa [#allocation3 + $0x1], 1 }

</bundles_post_ra>
